<compile_context>
chip_gen: v6e
topology: v6e:2x2x1
jax: 0.10.0
libtpu: 0.0.40
codegen_flags: <defaults>
</compile_context>

<pallas_src>
import functools
import numpy as np

import jax
import jax.numpy as jnp
from jax import lax
from jax.experimental import pallas as pl
from jax.experimental.pallas import tpu as pltpu


# ---------------------------------------------------------------------------
# Kernel: one grid step = `bi` images x `tb` captions -> (tb, bi) score block
# ---------------------------------------------------------------------------
def _sim_score_kernel(lens_ref, s_ref, im_ref, w1sq_ref, out_ref, e3_ref, *,
                      lambda_softmax, attn_precision):
    i = pl.program_id(1)                       # caption-block index (inner grid axis)
    tb, L, D = s_ref.shape
    bi, R, _ = im_ref.shape
    X = tb * L                                 # stacked caption words (lanes)
    BR = bi * R
    k = R // 3                                 # number of lowest-scoring regions dropped

    # ---- wide part: one attention matmul over all tb captions at once -----------
    im2 = im_ref[...].reshape(BR, D)           # leading-dim merge, D stays on lanes
    txt = s_ref[...].reshape(X, D)             # (tb*L, D) stacked captions
    # HIGHEST by default: the hard `p > 1/n_word` filter below is discontinuous in
    # these values; Mosaic only supports DEFAULT/HIGHEST contract precision and
    # DEFAULT (single-pass bf16) can flip the threshold vs. the reference.
    attn = lax.dot_general(im2, txt, (((1,), (1,)), ((), ())),
                           precision=attn_precision,
                           preferred_element_type=jnp.float32)        # (BR, X)
    attn = jnp.where(attn >= 0.0, attn, 0.1 * attn)                   # LeakyReLU(0.1)

    # l2norm over the region axis per (image, word); one EUP rsqrt, no divide.
    a3 = attn.reshape(bi, R, X)
    a3 = a3 * lax.rsqrt(jnp.sum(a3 * a3, axis=1, keepdims=True) + 1e-16)
    logits = a3.reshape(BR, X) * lambda_softmax

    # Per-row max over *all* X columns is a constant shift within every caption
    # segment, so each caption's softmax is unchanged; |logits| <= lambda, no overflow.
    col = lax.broadcasted_iota(jnp.int32, (1, X), 1)
    valid = jnp.zeros((1, X), jnp.float32)
    for t in range(tb):                        # tb is small; static mask build is cheap
        n_t = lens_ref[i * tb + t]
        valid = jnp.where((col >= t * L) & (col < t * L + n_t), 1.0, valid)
    mx = jnp.max(logits, axis=1, keepdims=True)
    e = jnp.exp(logits - mx) * valid                                  # (BR, X)

    # Re-layout per caption into scratch so the tail loop can index captions with a
    # dynamic (loop) id on the leading axis -- keeps the tail a real fori_loop.
    for t in range(tb):
        e3_ref[t] = e[:, t * L:(t + 1) * L]

    # hoisted loop invariants (JAX does not CSE broadcasts inside loops); iotas are
    # batch-independent -> (1, R, R) only.
    inv_cnt = jnp.full((1, R), 1.0 / float(R - k), jnp.float32)
    ri = lax.broadcasted_iota(jnp.int32, (1, R, R), 1)
    rj = lax.broadcasted_iota(jnp.int32, (1, R, R), 2)
    w1sq = w1sq_ref[...]                                              # (bi, R)

    # ---- per-caption tail: softmax denom, threshold, weighted context, cosine,
    #      drop-lowest-k, store.  fori_loop bounds live ranges (no tb-way unroll). ----
    def tail(t, carry):
        n_f = lens_ref[i * tb + t].astype(jnp.float32)
        e_t = e3_ref[t]                                               # (BR, L)
        txt_t = s_ref[t]                                              # (L, D)

        denom = jnp.sum(e_t, axis=1, keepdims=True)                   # (BR, 1)
        # p > 1/n  <=>  e * n > denom : exact decision, no divide / reciprocal needed.
        keep = (e_t * n_f) > denom
        p_t = jnp.where(keep, e_t * pl.reciprocal(denom, approx=True), 0.0)

        # weighted context; default (single-pass) MXU precision is plenty here.
        wc = lax.dot_general(p_t, txt_t, (((1,), (0,)), ((), ())),
                             preferred_element_type=jnp.float32)      # (BR, D)
        wc3 = wc.reshape(bi, R, D)
        w12 = jnp.sum(im_ref[...] * wc3, axis=2)                      # (bi, R)
        w2sq = jnp.sum(wc3 * wc3, axis=2)                             # (bi, R)
        # rsqrt(max(w1sq*w2sq, eps^2)) == 1/max(w1*w2, eps): identical to reference.
        cos = w12 * lax.rsqrt(jnp.maximum(w1sq * w2sq, 1e-16))

        # drop the R//3 smallest regions via a one-shot stable rank count
        # (equivalent to torch sort-ascending + drop first k).
        ci = cos[:, :, None]                                          # (bi, R, 1)
        cj = cos[:, None, :]                                          # (bi, 1, R)
        below = (cj < ci) | ((cj == ci) & (rj < ri))                  # (bi, R, R)
        rank = jnp.sum(below.astype(jnp.float32), axis=2)             # (bi, R)
        kept = jnp.where(rank >= float(k), cos, 0.0)

        # (1, R) x (bi, R)^T -> (1, bi): mean of kept regions, images on lanes.
        row = lax.dot_general(inv_cnt, kept, (((1,), (1,)), ((), ())),
                              preferred_element_type=jnp.float32)
        out_ref[pl.ds(t, 1), :] = row
        return carry

    lax.fori_loop(0, tb, tail, 0, unroll=(tb <= 2))


# ---------------------------------------------------------------------------
# Tiling heuristics
# ---------------------------------------------------------------------------
def _round_up(x, m):
    return ((x + m - 1) // m) * m


def _vmem_capacity_bytes():
    try:
        return int(pltpu.get_tpu_info().vmem_capacity_bytes)
    except Exception:                      # pragma: no cover - API drift / older jax
        return 64 * 1024 * 1024            # conservative: v7x per-TensorCore VMEM


def _choose_tb(B, L, lane_target=256):
    """Captions per grid step: smallest batch divisor with tb*L >= lane_target lanes.
    Restricted to (tb % 8 == 0 or tb == B) so the (tb, bi) output block keeps a legal
    sublane tile (and unmasked sublane stores)."""
    divs = [d for d in range(1, B + 1) if B % d == 0 and (d % 8 == 0 or d == B)]
    cands = [d for d in divs if d * L >= lane_target]
    return min(cands) if cands else B


def _working_set_bytes(B, R, D, L, tb, bi):
    """Generous per-step VMEM estimate: double-buffered pipeline blocks, the e3
    scratch, and the large value intermediates (attn chain, weighted context, rank
    tensors), with (8,128) padding."""
    f32 = 4
    X = _round_up(tb * L, 128)
    Lp = _round_up(L, 128)
    Ls = _round_up(L, 8)
    Rs = _round_up(R, 8)
    Rl = _round_up(R, 128)
    BR = bi * Rs
    blocks = 2 * (bi * Rs * D + tb * Ls * D + bi * Rl + tb * _round_up(bi, 128))
    scratch = tb * BR * Lp
    vals = 2 * BR * D            # image operand copies feeding the attention matmul
    vals += 4 * BR * X           # attn / l2norm / logits / exp chain
    vals += 3 * BR * D           # weighted context + cosine temporaries (one tail iter)
    vals += 2 * bi * Rs * Rl     # rank-count tensors
    return (blocks + scratch + vals) * f32 + (2 << 20)


def _choose_bi(B, R, D, L, tb, budget):
    """Image-batch tile: largest batch divisor (%8==0 or ==B) whose working set fits."""
    cands = [d for d in range(B, 0, -1) if B % d == 0 and (d % 8 == 0 or d == B)]
    for bi in cands:
        if _working_set_bytes(B, R, D, L, tb, bi) <= budget:
            return bi
    return cands[-1]


# ---------------------------------------------------------------------------
# Wrappers
# ---------------------------------------------------------------------------
def compute_sim_scores(im, s, cap_lens, *, lambda_softmax,
                       block_captions=None, block_images=None,
                       attn_precision=lax.Precision.HIGHEST):
    B, R, D = im.shape
    Bt, L, Dt = s.shape
    assert Bt == B and Dt == D
    im = im.astype(jnp.float32)
    s = s.astype(jnp.float32)
    # hoisted out of the kernel: squared per-region image norms are caption independent
    w1sq = jnp.sum(im * im, axis=2)                                   # (B, R)

    capacity = _vmem_capacity_bytes()
    tb = block_captions if block_captions is not None else _choose_tb(B, L)
    bi = (block_images if block_images is not None
          else _choose_bi(B, R, D, L, tb, budget=int(0.75 * capacity)))
    assert B % tb == 0 and B % bi == 0
    n_img, n_cap = B // bi, B // tb

    ws = _working_set_bytes(B, R, D, L, tb, bi)
    vmem_limit = int(max(32 * 1024 * 1024, min(0.9 * capacity, 1.5 * ws)))

    kernel = functools.partial(_sim_score_kernel,
                               lambda_softmax=float(lambda_softmax),
                               attn_precision=attn_precision)

    # TODO(synk): when BlockSpec pipeline_mode=pl.Buffered(1) is universally supported,
    # single-buffer the image / w1sq blocks (constant along the inner caption axis) to
    # reclaim their second pipeline buffer on v7x.
    out3 = pl.pallas_call(
        kernel,
        out_shape=jax.ShapeDtypeStruct((n_img, B, bi), jnp.float32),
        grid_spec=pltpu.PrefetchScalarGridSpec(
            num_scalar_prefetch=1,
            grid=(n_img, n_cap),                    # image tiles outer, captions inner
            in_specs=[
                pl.BlockSpec((tb, L, D), lambda j, i, lens: (i, 0, 0)),   # captions
                pl.BlockSpec((bi, R, D), lambda j, i, lens: (j, 0, 0)),   # image tile
                pl.BlockSpec((bi, R), lambda j, i, lens: (j, 0)),         # image sq norms
            ],
            out_specs=pl.BlockSpec((None, tb, bi), lambda j, i, lens: (j, i, 0)),
            scratch_shapes=[pltpu.VMEM((tb, bi * R, L), jnp.float32)],
        ),
        compiler_params=pltpu.CompilerParams(
            dimension_semantics=("parallel", "parallel"),
            vmem_limit_bytes=vmem_limit,
        ),
    )(cap_lens.astype(jnp.int32), s, im, w1sq)

    # (n_img, B_txt, bi) -> (B_txt, B_im)
    return out3.transpose(1, 0, 2).reshape(B, B)


def contrastive_loss(im, s, cap_lens, *, lambda_softmax, margin=0.0,
                     max_violation=False, block_captions=None, block_images=None):
    scores = compute_sim_scores(im, s, cap_lens, lambda_softmax=lambda_softmax,
                                block_captions=block_captions,
                                block_images=block_images)
    B = scores.shape[0]
    # Tiny (B, B) reduction done in plain jnp so XLA fuses it.
    diag = jnp.diagonal(scores)
    cost_s = jnp.maximum(margin + scores - diag[:, None], 0.0)
    cost_im = jnp.maximum(margin + scores - diag[None, :], 0.0)
    eye = jnp.eye(B, dtype=bool)
    cost_s = jnp.where(eye, 0.0, cost_s)
    cost_im = jnp.where(eye, 0.0, cost_im)
    if max_violation:
        cost_s = jnp.max(cost_s, axis=1)
        cost_im = jnp.max(cost_im, axis=0)
    return jnp.sum(cost_s) + jnp.sum(cost_im), scores


# ---------------------------------------------------------------------------
# Pure numpy reference (mirrors the PyTorch code) for validation
# ---------------------------------------------------------------------------
def _reference(im, s, lens, lambda_softmax, margin, max_violation):
    im = np.asarray(im, np.float64)
    s = np.asarray(s, np.float64)
    B, R, D = im.shape
    scores = np.zeros((B, B), np.float64)
    for i in range(B):
        n = int(lens[i])
        txt = s[i, :n, :]                                   # (n, D)
        attn = np.einsum('ld,brd->blr', txt, im)            # (B, n, R)
        attn = np.where(attn >= 0, attn, 0.1 * attn)
        attn = attn / (np.sqrt((attn ** 2).sum(axis=2, keepdims=True)) + 1e-8)
        a = np.transpose(attn, (0, 2, 1)) * lambda_softmax  # (B, R, n)
        a = a - a.max(axis=2, keepdims=True)
        e = np.exp(a)
        p = e / e.sum(axis=2, keepdims=True)
        p = p * (p > 1.0 / n)
        wc = np.einsum('brl,ld->brd', p, txt)
        w12 = (im * wc).sum(axis=2)
        w1 = np.sqrt((im ** 2).sum(axis=2))
        w2 = np.sqrt((wc ** 2).sum(axis=2))
        cos = w12 / np.maximum(w1 * w2, 1e-8)
        cs = np.sort(cos, axis=1)[:, R // 3:]
        scores[i] = cs.mean(axis=1)
    diag = np.diag(scores).reshape(B, 1)
    cost_s = np.maximum(margin + scores - diag, 0.0)
    cost_im = np.maximum(margin + scores - diag.T, 0.0)
    eye = np.eye(B, dtype=bool)
    cost_s[eye] = 0.0
    cost_im[eye] = 0.0
    if max_violation:
        cost_s = cost_s.max(axis=1)
        cost_im = cost_im.max(axis=0)
    return scores, cost_s.sum() + cost_im.sum()


# ---------------------------------------------------------------------------
if __name__ == "__main__":
    lambda_softmax = 9.0               # opt.lambda_softmax
    margin = 0.2

    # ---- case 1: small shapes, single-block grid -----------------------------
    B, R, D, L = 4, 8, 128, 8          # batch, image regions, embed dim, max words
    key = jax.random.PRNGKey(0)
    k1, k2, k3 = jax.random.split(key, 3)
    im = jax.random.normal(k1, (B, R, D), jnp.float32)
    s = jax.random.normal(k2, (B, L, D), jnp.float32)
    cap_lens = jax.random.randint(k3, (B,), 3, L + 1, jnp.int32)

    fn = jax.jit(functools.partial(contrastive_loss, lambda_softmax=lambda_softmax,
                                   margin=margin, max_violation=False))
    loss, scores = fn(im, s, cap_lens)
    jax.block_until_ready(loss)

    fn_mv = jax.jit(functools.partial(contrastive_loss, lambda_softmax=lambda_softmax,
                                      margin=margin, max_violation=True))
    loss_mv, _ = fn_mv(im, s, cap_lens)
    jax.block_until_ready(loss_mv)

    ref_scores, ref_loss = _reference(np.array(im), np.array(s), np.array(cap_lens),
                                      lambda_softmax, margin, False)
    _, ref_loss_mv = _reference(np.array(im), np.array(s), np.array(cap_lens),
                                lambda_softmax, margin, True)

    # Approximate EUP reciprocal/rsqrt + single-pass wc matmul trade ~1e-4..1e-3
    # relative error against the float64 reference, hence the relaxed tolerances.
    np.testing.assert_allclose(np.array(scores), ref_scores, rtol=2e-2, atol=2e-3)
    np.testing.assert_allclose(float(loss), ref_loss, rtol=2e-2, atol=2e-3)
    np.testing.assert_allclose(float(loss_mv), ref_loss_mv, rtol=2e-2, atol=2e-3)

    # ---- case 2: exercise the tiled path (2x2 grid: image tiles x caption blocks) ---
    B2, R2, D2, L2 = 16, 8, 128, 16
    k4, k5, k6 = jax.random.split(jax.random.PRNGKey(1), 3)
    im2 = jax.random.normal(k4, (B2, R2, D2), jnp.float32)
    s2 = jax.random.normal(k5, (B2, L2, D2), jnp.float32)
    lens2 = jax.random.randint(k6, (B2,), 3, L2 + 1, jnp.int32)

    fn2 = jax.jit(functools.partial(contrastive_loss, lambda_softmax=lambda_softmax,
                                    margin=margin, max_violation=False,
                                    block_captions=8, block_images=8))
    loss2, scores2 = fn2(im2, s2, lens2)
    jax.block_until_ready(loss2)

    ref_scores2, ref_loss2 = _reference(np.array(im2), np.array(s2), np.array(lens2),
                                        lambda_softmax, margin, False)
    np.testing.assert_allclose(np.array(scores2), ref_scores2, rtol=2e-2, atol=2e-3)
    np.testing.assert_allclose(float(loss2), ref_loss2, rtol=2e-2, atol=2e-3)

    print("KERNEL_OK")
</pallas_src>

<mosaic_0001>
module attributes {stable_mosaic.version = 11 : i64} {
  func.func @_sim_score_kernel(%arg0: i32, %arg1: i32, %arg2: memref<4xi32, #tpu.memory_space<smem>>, %arg3: memref<4x8x128xf32, #tpu.memory_space<vmem>>, %arg4: memref<4x8x128xf32, #tpu.memory_space<vmem>>, %arg5: memref<4x8xf32, #tpu.memory_space<vmem>>, %arg6: memref<1x4x4xf32, #tpu.memory_space<vmem>>, %arg7: memref<4x32x8xf32, #tpu.memory_space<vmem>>) attributes {dimension_semantics = [#tpu.dimension_semantics<parallel>, #tpu.dimension_semantics<parallel>], iteration_bounds = array<i64: 1, 1>, scalar_prefetch = 1 : i64, scratch_operands = 1 : i64, tpu.core_type = #tpu.core_type<tc>, window_params = [{transform_indices = @transform_0, window_bounds = array<i64: 4, 8, 128>}, {transform_indices = @transform_1, window_bounds = array<i64: 4, 8, 128>}, {transform_indices = @transform_2, window_bounds = array<i64: 4, 8>}, {transform_indices = @transform_3, window_bounds = array<i64: 1, 4, 4>}]} {
    %c0 = arith.constant 0 : index
    %c0_0 = arith.constant 0 : index
    %c0_1 = arith.constant 0 : index
    %0 = vector.load %arg4[%c0, %c0_0, %c0_1] : memref<4x8x128xf32, #tpu.memory_space<vmem>>, vector<4x8x128xf32>
    %1 = vector.shape_cast %0 : vector<4x8x128xf32> to vector<32x128xf32>
    %c0_2 = arith.constant 0 : index
    %c0_3 = arith.constant 0 : index
    %c0_4 = arith.constant 0 : index
    %2 = vector.load %arg3[%c0_2, %c0_3, %c0_4] : memref<4x8x128xf32, #tpu.memory_space<vmem>>, vector<4x8x128xf32>
    %3 = vector.shape_cast %2 : vector<4x8x128xf32> to vector<32x128xf32>
    %cst = arith.constant dense<0.000000e+00> : vector<32x32xf32>
    %4 = tpu.matmul %1, %3, %cst {dimension_numbers = #tpu.dot_dimension_numbers<[1], [1], [0], [0], [0, 0, 1, 0], [], []>, precision = #tpu.contract_precision<fp32>} : vector<32x128xf32>, vector<32x128xf32>, vector<32x32xf32> -> vector<32x32xf32>
    %cst_5 = arith.constant 0.000000e+00 : f32
    %5 = vector.broadcast %cst_5 : f32 to vector<32x32xf32>
    %6 = arith.cmpf oge, %4, %5 : vector<32x32xf32>
    %cst_6 = arith.constant 1.000000e-01 : f32
    %7 = vector.broadcast %cst_6 : f32 to vector<32x32xf32>
    %8 = arith.mulf %7, %4 : vector<32x32xf32>
    %9 = arith.select %6, %4, %8 : vector<32x32xi1>, vector<32x32xf32>
    %10 = vector.shape_cast %9 : vector<32x32xf32> to vector<4x8x32xf32>
    %11 = arith.mulf %10, %10 : vector<4x8x32xf32>
    %cst_7 = arith.constant dense<0.000000e+00> : vector<4x32xf32>
    %12 = vector.multi_reduction <add>, %11, %cst_7 [1] : vector<4x8x32xf32> to vector<4x32xf32>
    %13 = vector.shape_cast %12 : vector<4x32xf32> to vector<4x1x32xf32>
    %cst_8 = arith.constant 1.000000e-16 : f32
    %14 = vector.broadcast %cst_8 : f32 to vector<4x1x32xf32>
    %15 = arith.addf %13, %14 : vector<4x1x32xf32>
    %16 = math.rsqrt %15 : vector<4x1x32xf32>
    %17 = vector.broadcast %16 : vector<4x1x32xf32> to vector<4x8x32xf32>
    %18 = arith.mulf %10, %17 : vector<4x8x32xf32>
    %19 = vector.shape_cast %18 : vector<4x8x32xf32> to vector<32x32xf32>
    %cst_9 = arith.constant 9.000000e+00 : f32
    %20 = vector.broadcast %cst_9 : f32 to vector<32x32xf32>
    %21 = arith.mulf %19, %20 : vector<32x32xf32>
    %22 = tpu.iota {dimensions = array<i32: 1>} : vector<1x32xi32>
    %cst_10 = arith.constant 0.000000e+00 : f32
    %23 = vector.broadcast %cst_10 : f32 to vector<1x32xf32>
    %c4_i32 = arith.constant 4 : i32
    %24 = arith.muli %arg1, %c4_i32 : i32
    %c0_i32 = arith.constant 0 : i32
    %25 = arith.addi %24, %c0_i32 : i32
    %26 = arith.index_cast %25 : i32 to index
    %27 = memref.load %arg2[%26] : memref<4xi32, #tpu.memory_space<smem>>
    %c0_i32_11 = arith.constant 0 : i32
    %28 = vector.broadcast %c0_i32_11 : i32 to vector<1x32xi32>
    %29 = arith.cmpi sge, %22, %28 : vector<1x32xi32>
    %c0_i32_12 = arith.constant 0 : i32
    %30 = arith.addi %c0_i32_12, %27 : i32
    %31 = vector.broadcast %30 : i32 to vector<1x32xi32>
    %32 = arith.cmpi slt, %22, %31 : vector<1x32xi32>
    %33 = arith.andi %29, %32 : vector<1x32xi1>
    %cst_13 = arith.constant 1.000000e+00 : f32
    %34 = vector.broadcast %cst_13 : f32 to vector<1x32xf32>
    %35 = arith.select %33, %34, %23 : vector<1x32xi1>, vector<1x32xf32>
    %c4_i32_14 = arith.constant 4 : i32
    %36 = arith.muli %arg1, %c4_i32_14 : i32
    %c1_i32 = arith.constant 1 : i32
    %37 = arith.addi %36, %c1_i32 : i32
    %38 = arith.index_cast %37 : i32 to index
    %39 = memref.load %arg2[%38] : memref<4xi32, #tpu.memory_space<smem>>
    %c8_i32 = arith.constant 8 : i32
    %40 = vector.broadcast %c8_i32 : i32 to vector<1x32xi32>
    %41 = arith.cmpi sge, %22, %40 : vector<1x32xi32>
    %c8_i32_15 = arith.constant 8 : i32
    %42 = arith.addi %c8_i32_15, %39 : i32
    %43 = vector.broadcast %42 : i32 to vector<1x32xi32>
    %44 = arith.cmpi slt, %22, %43 : vector<1x32xi32>
    %45 = arith.andi %41, %44 : vector<1x32xi1>
    %cst_16 = arith.constant 1.000000e+00 : f32
    %46 = vector.broadcast %cst_16 : f32 to vector<1x32xf32>
    %47 = arith.select %45, %46, %35 : vector<1x32xi1>, vector<1x32xf32>
    %c4_i32_17 = arith.constant 4 : i32
    %48 = arith.muli %arg1, %c4_i32_17 : i32
    %c2_i32 = arith.constant 2 : i32
    %49 = arith.addi %48, %c2_i32 : i32
    %50 = arith.index_cast %49 : i32 to index
    %51 = memref.load %arg2[%50] : memref<4xi32, #tpu.memory_space<smem>>
    %c16_i32 = arith.constant 16 : i32
    %52 = vector.broadcast %c16_i32 : i32 to vector<1x32xi32>
    %53 = arith.cmpi sge, %22, %52 : vector<1x32xi32>
    %c16_i32_18 = arith.constant 16 : i32
    %54 = arith.addi %c16_i32_18, %51 : i32
    %55 = vector.broadcast %54 : i32 to vector<1x32xi32>
    %56 = arith.cmpi slt, %22, %55 : vector<1x32xi32>
    %57 = arith.andi %53, %56 : vector<1x32xi1>
    %cst_19 = arith.constant 1.000000e+00 : f32
    %58 = vector.broadcast %cst_19 : f32 to vector<1x32xf32>
    %59 = arith.select %57, %58, %47 : vector<1x32xi1>, vector<1x32xf32>
    %c4_i32_20 = arith.constant 4 : i32
    %60 = arith.muli %arg1, %c4_i32_20 : i32
    %c3_i32 = arith.constant 3 : i32
    %61 = arith.addi %60, %c3_i32 : i32
    %62 = arith.index_cast %61 : i32 to index
    %63 = memref.load %arg2[%62] : memref<4xi32, #tpu.memory_space<smem>>
    %c24_i32 = arith.constant 24 : i32
    %64 = vector.broadcast %c24_i32 : i32 to vector<1x32xi32>
    %65 = arith.cmpi sge, %22, %64 : vector<1x32xi32>
    %c24_i32_21 = arith.constant 24 : i32
    %66 = arith.addi %c24_i32_21, %63 : i32
    %67 = vector.broadcast %66 : i32 to vector<1x32xi32>
    %68 = arith.cmpi slt, %22, %67 : vector<1x32xi32>
    %69 = arith.andi %65, %68 : vector<1x32xi1>
    %cst_22 = arith.constant 1.000000e+00 : f32
    %70 = vector.broadcast %cst_22 : f32 to vector<1x32xf32>
    %71 = arith.select %69, %70, %59 : vector<1x32xi1>, vector<1x32xf32>
    %cst_23 = arith.constant dense<0xFF800000> : vector<32xf32>
    %72 = vector.multi_reduction <maximumf>, %21, %cst_23 [1] : vector<32x32xf32> to vector<32xf32>
    %73 = vector.shape_cast %72 : vector<32xf32> to vector<32x1xf32>
    %74 = vector.broadcast %73 : vector<32x1xf32> to vector<32x32xf32>
    %75 = arith.subf %21, %74 : vector<32x32xf32>
    %76 = math.exp %75 : vector<32x32xf32>
    %77 = vector.broadcast %71 : vector<1x32xf32> to vector<32x32xf32>
    %78 = arith.mulf %76, %77 : vector<32x32xf32>
    %79 = vector.extract_strided_slice %78 {offsets = [0, 0], sizes = [32, 8], strides = [1, 1]} : vector<32x32xf32> to vector<32x8xf32>
    %c0_24 = arith.constant 0 : index
    %c0_25 = arith.constant 0 : index
    %c0_26 = arith.constant 0 : index
    %80 = vector.load %arg7[%c0_24, %c0_25, %c0_26] : memref<4x32x8xf32, #tpu.memory_space<vmem>>, vector<1x32x8xf32>
    %81 = vector.shape_cast %80 : vector<1x32x8xf32> to vector<32x8xf32>
    %82 = vector.shape_cast %79 : vector<32x8xf32> to vector<1x32x8xf32>
    tpu.vector_store %arg7[%c0_24, %c0_25, %c0_26], %82 {strides = array<i32>} : memref<4x32x8xf32, #tpu.memory_space<vmem>>, vector<1x32x8xf32>,
    %83 = vector.extract_strided_slice %78 {offsets = [0, 8], sizes = [32, 8], strides = [1, 1]} : vector<32x32xf32> to vector<32x8xf32>
    %c1 = arith.constant 1 : index
    %c0_27 = arith.constant 0 : index
    %c0_28 = arith.constant 0 : index
    %84 = vector.load %arg7[%c1, %c0_27, %c0_28] : memref<4x32x8xf32, #tpu.memory_space<vmem>>, vector<1x32x8xf32>
    %85 = vector.shape_cast %84 : vector<1x32x8xf32> to vector<32x8xf32>
    %86 = vector.shape_cast %83 : vector<32x8xf32> to vector<1x32x8xf32>
    tpu.vector_store %arg7[%c1, %c0_27, %c0_28], %86 {strides = array<i32>} : memref<4x32x8xf32, #tpu.memory_space<vmem>>, vector<1x32x8xf32>,
    %87 = vector.extract_strided_slice %78 {offsets = [0, 16], sizes = [32, 8], strides = [1, 1]} : vector<32x32xf32> to vector<32x8xf32>
    %c2 = arith.constant 2 : index
    %c0_29 = arith.constant 0 : index
    %c0_30 = arith.constant 0 : index
    %88 = vector.load %arg7[%c2, %c0_29, %c0_30] : memref<4x32x8xf32, #tpu.memory_space<vmem>>, vector<1x32x8xf32>
    %89 = vector.shape_cast %88 : vector<1x32x8xf32> to vector<32x8xf32>
    %90 = vector.shape_cast %87 : vector<32x8xf32> to vector<1x32x8xf32>
    tpu.vector_store %arg7[%c2, %c0_29, %c0_30], %90 {strides = array<i32>} : memref<4x32x8xf32, #tpu.memory_space<vmem>>, vector<1x32x8xf32>,
    %91 = vector.extract_strided_slice %78 {offsets = [0, 24], sizes = [32, 8], strides = [1, 1]} : vector<32x32xf32> to vector<32x8xf32>
    %c3 = arith.constant 3 : index
    %c0_31 = arith.constant 0 : index
    %c0_32 = arith.constant 0 : index
    %92 = vector.load %arg7[%c3, %c0_31, %c0_32] : memref<4x32x8xf32, #tpu.memory_space<vmem>>, vector<1x32x8xf32>
    %93 = vector.shape_cast %92 : vector<1x32x8xf32> to vector<32x8xf32>
    %94 = vector.shape_cast %91 : vector<32x8xf32> to vector<1x32x8xf32>
    tpu.vector_store %arg7[%c3, %c0_31, %c0_32], %94 {strides = array<i32>} : memref<4x32x8xf32, #tpu.memory_space<vmem>>, vector<1x32x8xf32>,
    %cst_33 = arith.constant 0.166666672 : f32
    %95 = vector.broadcast %cst_33 : f32 to vector<1x8xf32>
    %96 = tpu.iota {dimensions = array<i32: 1>} : vector<1x8x8xi32>
    %97 = tpu.iota {dimensions = array<i32: 2>} : vector<1x8x8xi32>
    %c0_34 = arith.constant 0 : index
    %c0_35 = arith.constant 0 : index
    %98 = vector.load %arg5[%c0_34, %c0_35] : memref<4x8xf32, #tpu.memory_space<vmem>>, vector<4x8xf32>
    %c0_i32_36 = arith.constant 0 : i32
    %c4_i32_37 = arith.constant 4 : i32
    %99 = arith.addi %c0_i32_36, %c4_i32_37 : i32
    %c1_i32_38 = arith.constant 1 : i32
    scf.for %arg8 = %c0_i32_36 to %99 step %c1_i32_38  : i32 {
      %c4_i32_40 = arith.constant 4 : i32
      %100 = arith.muli %arg1, %c4_i32_40 : i32
      %101 = arith.addi %100, %arg8 : i32
      %102 = arith.index_cast %101 : i32 to index
      %103 = memref.load %arg2[%102] : memref<4xi32, #tpu.memory_space<smem>>
      %104 = arith.sitofp %103 : i32 to f32
      %105 = arith.index_cast %arg8 : i32 to index
      %c0_41 = arith.constant 0 : index
      %c0_42 = arith.constant 0 : index
      %106 = vector.load %arg7[%105, %c0_41, %c0_42] : memref<4x32x8xf32, #tpu.memory_space<vmem>>, vector<1x32x8xf32>
      %107 = vector.shape_cast %106 : vector<1x32x8xf32> to vector<32x8xf32>
      %108 = arith.index_cast %arg8 : i32 to index
      %c0_43 = arith.constant 0 : index
      %c0_44 = arith.constant 0 : index
      %109 = vector.load %arg3[%108, %c0_43, %c0_44] : memref<4x8x128xf32, #tpu.memory_space<vmem>>, vector<1x8x128xf32>
      %110 = vector.shape_cast %109 : vector<1x8x128xf32> to vector<8x128xf32>
      %cst_45 = arith.constant dense<0.000000e+00> : vector<32xf32>
      %111 = vector.multi_reduction <add>, %107, %cst_45 [1] : vector<32x8xf32> to vector<32xf32>
      %112 = vector.shape_cast %111 : vector<32xf32> to vector<32x1xf32>
      %113 = vector.broadcast %104 : f32 to vector<32x8xf32>
      %114 = arith.mulf %107, %113 : vector<32x8xf32>
      %115 = vector.broadcast %112 : vector<32x1xf32> to vector<32x8xf32>
      %116 = arith.cmpf ogt, %114, %115 : vector<32x8xf32>
      %117 = tpu.reciprocal %112 {approx = true} : vector<32x1xf32> -> vector<32x1xf32>
      %118 = vector.broadcast %117 : vector<32x1xf32> to vector<32x8xf32>
      %119 = arith.mulf %107, %118 : vector<32x8xf32>
      %cst_46 = arith.constant 0.000000e+00 : f32
      %120 = vector.broadcast %cst_46 : f32 to vector<32x8xf32>
      %121 = arith.select %116, %119, %120 : vector<32x8xi1>, vector<32x8xf32>
      %cst_47 = arith.constant dense<0.000000e+00> : vector<32x128xf32>
      %122 = tpu.matmul %121, %110, %cst_47 {dimension_numbers = #tpu.dot_dimension_numbers<[1], [0], [0], [1], [0, 0, 1, 1], [], []>} : vector<32x8xf32>, vector<8x128xf32>, vector<32x128xf32> -> vector<32x128xf32>
      %123 = vector.shape_cast %122 : vector<32x128xf32> to vector<4x8x128xf32>
      %c0_48 = arith.constant 0 : index
      %c0_49 = arith.constant 0 : index
      %c0_50 = arith.constant 0 : index
      %124 = vector.load %arg4[%c0_48, %c0_49, %c0_50] : memref<4x8x128xf32, #tpu.memory_space<vmem>>, vector<4x8x128xf32>
      %125 = arith.mulf %124, %123 : vector<4x8x128xf32>
      %cst_51 = arith.constant dense<0.000000e+00> : vector<4x8xf32>
      %126 = vector.multi_reduction <add>, %125, %cst_51 [2] : vector<4x8x128xf32> to vector<4x8xf32>
      %127 = arith.mulf %123, %123 : vector<4x8x128xf32>
      %cst_52 = arith.constant dense<0.000000e+00> : vector<4x8xf32>
      %128 = vector.multi_reduction <add>, %127, %cst_52 [2] : vector<4x8x128xf32> to vector<4x8xf32>
      %129 = arith.mulf %98, %128 : vector<4x8xf32>
      %cst_53 = arith.constant 1.000000e-16 : f32
      %130 = vector.broadcast %cst_53 : f32 to vector<4x8xf32>
      %131 = arith.maximumf %129, %130 : vector<4x8xf32>
      %132 = math.rsqrt %131 : vector<4x8xf32>
      %133 = arith.mulf %126, %132 : vector<4x8xf32>
      %134 = vector.shape_cast %133 : vector<4x8xf32> to vector<4x8x1xf32>
      %135 = vector.shape_cast %133 : vector<4x8xf32> to vector<4x1x8xf32>
      %136 = vector.broadcast %135 : vector<4x1x8xf32> to vector<4x8x8xf32>
      %137 = vector.broadcast %134 : vector<4x8x1xf32> to vector<4x8x8xf32>
      %138 = arith.cmpf olt, %136, %137 : vector<4x8x8xf32>
      %139 = vector.broadcast %135 : vector<4x1x8xf32> to vector<4x8x8xf32>
      %140 = vector.broadcast %134 : vector<4x8x1xf32> to vector<4x8x8xf32>
      %141 = arith.cmpf oeq, %139, %140 : vector<4x8x8xf32>
      %142 = arith.cmpi slt, %97, %96 : vector<1x8x8xi32>
      %143 = vector.broadcast %142 : vector<1x8x8xi1> to vector<4x8x8xi1>
      %144 = arith.andi %141, %143 : vector<4x8x8xi1>
      %145 = arith.ori %138, %144 : vector<4x8x8xi1>
      %146 = arith.extui %145 : vector<4x8x8xi1> to vector<4x8x8xi32>
      %147 = arith.sitofp %146 : vector<4x8x8xi32> to vector<4x8x8xf32>
      %cst_54 = arith.constant dense<0.000000e+00> : vector<4x8xf32>
      %148 = vector.multi_reduction <add>, %147, %cst_54 [2] : vector<4x8x8xf32> to vector<4x8xf32>
      %cst_55 = arith.constant 2.000000e+00 : f32
      %149 = vector.broadcast %cst_55 : f32 to vector<4x8xf32>
      %150 = arith.cmpf oge, %148, %149 : vector<4x8xf32>
      %cst_56 = arith.constant 0.000000e+00 : f32
      %151 = vector.broadcast %cst_56 : f32 to vector<4x8xf32>
      %152 = arith.select %150, %133, %151 : vector<4x8xi1>, vector<4x8xf32>
      %cst_57 = arith.constant dense<0.000000e+00> : vector<1x4xf32>
      %153 = tpu.matmul %95, %152, %cst_57 {dimension_numbers = #tpu.dot_dimension_numbers<[1], [1], [0], [0], [0, 0, 1, 0], [], []>} : vector<1x8xf32>, vector<4x8xf32>, vector<1x4xf32> -> vector<1x4xf32>
      %c0_58 = arith.constant 0 : index
      %154 = arith.index_cast %arg8 : i32 to index
      %c0_59 = arith.constant 0 : index
      %155 = vector.load %arg6[%c0_58, %154, %c0_59] : memref<1x4x4xf32, #tpu.memory_space<vmem>>, vector<1x1x4xf32>
      %156 = vector.shape_cast %155 : vector<1x1x4xf32> to vector<1x4xf32>
      %157 = vector.shape_cast %153 : vector<1x4xf32> to vector<1x1x4xf32>
      tpu.vector_store %arg6[%c0_58, %154, %c0_59], %157 {strides = array<i32>} : memref<1x4x4xf32, #tpu.memory_space<vmem>>, vector<1x1x4xf32>,
    }
    %c4_i32_39 = arith.constant 4 : i32
    return
  }
  func.func @transform_0(%arg0: i32, %arg1: i32, %arg2: memref<4xi32, #tpu.memory_space<smem>>) -> (i32, i32, i32) {
    %c0_i32 = arith.constant 0 : i32
    %c0_i32_0 = arith.constant 0 : i32
    %c0_i32_1 = arith.constant 0 : i32
    return %arg1, %c0_i32, %c0_i32_0 : i32, i32, i32
  }
  func.func @transform_1(%arg0: i32, %arg1: i32, %arg2: memref<4xi32, #tpu.memory_space<smem>>) -> (i32, i32, i32) {
    %c0_i32 = arith.constant 0 : i32
    %c0_i32_0 = arith.constant 0 : i32
    %c0_i32_1 = arith.constant 0 : i32
    return %arg0, %c0_i32, %c0_i32_0 : i32, i32, i32
  }
  func.func @transform_2(%arg0: i32, %arg1: i32, %arg2: memref<4xi32, #tpu.memory_space<smem>>) -> (i32, i32) {
    %c0_i32 = arith.constant 0 : i32
    %c0_i32_0 = arith.constant 0 : i32
    return %arg0, %c0_i32 : i32, i32
  }
  func.func @transform_3(%arg0: i32, %arg1: i32, %arg2: memref<4xi32, #tpu.memory_space<smem>>) -> (i32, i32, i32) {
    %c0_i32 = arith.constant 0 : i32
    %c0_i32_0 = arith.constant 0 : i32
    return %arg0, %arg1, %c0_i32 : i32, i32, i32
  }
}

</mosaic_0001>

<bundles_post_ra>
// kernel: contrastive_loss.1
= control target key start
LH: loop header
LB: loop body
LE: loop exit
PB: predicated region body
PF: predicated region fallthrough
CT: control target
= control target key end

     0   :  { %s3128_s0 = inlined_call_operand.vmem [shape: s32[4], index: 0, kind: input, shape index: {}]   ;;  %s3129_s1 = inlined_call_operand.hbm [shape: f32[4,8,128], index: 1, kind: input, shape index: {}]   ;;  %s3130_s2 = inlined_call_operand.vmem [shape: f32[4,8,128], index: 2, kind: input, shape index: {}]   ;;  %s3131_s3 = inlined_call_operand.vmem [shape: f32[4,8], index: 3, kind: input, shape index: {}]   ;;  %s3132_s4 = inlined_call_operand.vmem [shape: f32[1,4,4], index: 4, kind: output, shape index: {}]  }
   0x1   :  { %s9_s17 = sshll.u32 %s3128_s0, 4  ;;  %s10_s17 = int_to_ptr.vmem [resolvable:$true] %s9_s17 }
   0x2   :  { %s2284_s18 = scalar_lea.vmem %s10_s17, 16  ;;  %p2289_p1 = scmp.lt.s32.totalorder %s10_s17, %s10_s17 }
   0x3   :  { %p2285_p0 = scmp.ne.s32.totalorder %s10_s17, %s2284_s18  ;;  %p2290_p2 = scmp.lt.s32.totalorder %s2284_s18, %s2284_s18 }
   0x5   :  { %p2291_p3 = por %p2290_p2, %p2289_p1 }
   0x7   :  { %p2292_p4 = pnand %p2291_p3, %p2285_p0 }
   0x9   :  { %2295 = shalt.err (!%p2292_p4)  }
   0xa   :  { %s2328_s19 = smov [#allocation4]  }
   0xb   :  { %12 = dma.vmem_to_smem %s10_s17, 16, %s2328_s19, [#allocation3] }
   0xc   :  { %2320 = dma.done.wait [#allocation3], 16 }
   0xd   :  { %2321 = vsyncadd [#allocation3], 4294967280 }
   0xe   :  { %14 = sfence }
   0xf   :  { %15 = vsyncpa [#allocation6], 0  ;;  %s2329_s20 = smov [#allocation5]  }
  0x10   :  { %s21_s21 = sshll.u32 %s2329_s20, 4  ;;  %s22_s21 = int_to_ptr.vmem [resolvable:$true] %s21_s21 }
  0x11   :  { %s2304_s22 = scalar_lea.vmem %s22_s21, 512  ;;  %p2309_p6 = scmp.lt.s32.totalorder %s22_s21, %s22_s21 }
  0x12   :  { %p2305_p5 = scmp.ne.s32.totalorder %s22_s21, %s2304_s22  ;;  %p2310_p7 = scmp.lt.s32.totalorder %s2304_s22, %s2304_s22 }
  0x14   :  { %p2311_p8 = por %p2310_p7, %p2309_p6 }
  0x16   :  { %p2312_p9 = pnand %p2311_p8, %p2305_p5 }
  0x18   :  { %2315 = shalt.err (!%p2312_p9)
}
  0x19   :  { %s2330_s0 = smov 128   ;;  %s2331_s23 = smov 8  }
  0x1a   :  { %27 = dma.hbm_to_vmem [thread:$0]  %s3129_s1, 512, %s22_s21, [#allocation6], %s2330_s0, %s2330_s0, %s2331_s23  }
  0x1b   :  { %2322 = dma.done.wait [#allocation6], 512  }
  0x1c   :  { %2323 = vsyncadd [#allocation6], 4294966784  ;;  %v2374_v0 = vld [vmem:[%s3131_s3] sm:$0xf]  ;;  %v42_v1 = vld [vmem:[#allocation5 + $0x18] sm:$0xff]  ;;  %vm673_vm1 = vcmask 261120  }
  0x1d   :  { %v41_v2 = vld [vmem:[#allocation5 + $0x10] sm:$0xff]  ;;  %v2376_v3 = vand.u32 4294901760, %v42_v1  ;;  %v40_v5 = vld [vmem:[#allocation5 + $0x8] sm:$0xff]  ;;  %v39_v6 = vld [vmem:[#allocation5] sm:$0xff]  ;;  %s1961_s8 = sld [smem:[#allocation4 + $0x1]]  ;;  %vm3133_vm15 = vcmask 64512  }
  0x1e   :  { %v2378_v4 = vand.u32 4294901760, %v41_v2  ;;  %v35_v7 = vld [vmem:[%s3130_s2] sm:$0xff]  ;;  %v2383_v8 = vand.u32 4294901760, %v40_v5  ;;  %v2385_v9 = vand.u32 4294901760, %v39_v6  ;;  %v36_v11 = vld [vmem:[%s3130_s2 + $0x8] sm:$0xff]  ;;  %v37_v12 = vld [vmem:[%s3130_s2 + $0x10] sm:$0xff] }
  0x1f   :  { %v2387_v10 = vand.u32 4294901760, %v35_v7  ;;  %v38_v13 = vld [vmem:[%s3130_s2 + $0x18] sm:$0xff]  ;;  %2059 = vmatprep.subr.mxu0 %v2376_v3  ;;  %v178_v14 = vsub.f32 %v42_v1, %v2376_v3  ;;  %v2401_v16 = vand.u32 4294901760, %v36_v11  ;;  %v2403_v17 = vand.u32 4294901760, %v37_v12  ;;  %s721_s9 = sld [smem:[#allocation4]]  ;;  %s2333_s15 = smov 120  }
  0x20   :  { %v185_v15 = vsub.f32 %v41_v2, %v2378_v4  ;;  %2060 = vmatpush3.xpose.msra.mxu0 %v2376_v3  ;;  %v192_v19 = vsub.f32 %v40_v5, %v2383_v8  ;;  %v2411_v20 = vand.u32 4294901760, %v38_v13  ;;  %v199_v24 = vsub.f32 %v39_v6, %v2385_v9  ;;  %s1962_s10 = sld [smem:[#allocation4 + $0x2]]  ;;  %s2334_s16 = smov 112  }
  0x21   :  { %v2407_v18 = vsub.f32 %v35_v7, %v2387_v10  ;;  %2081 = vmatprep.mubr.f32.mxu1 %v2387_v10  ;;  %2061 = vmatprep.subr.mxu0 %v2378_v4  ;;  %v2414_v21 = vand.u32 4294901760, %v178_v14  ;;  %v2419_v23 = vsub.f32 %v36_v11, %v2401_v16  ;;  %v2426_v27 = vsub.f32 %v37_v12, %v2403_v17  ;;  %s1963_s11 = sld [smem:[#allocation4 + $0x3]]  ;;  %s2335_s17 = smov 104  }
  0x22   :  { %v2416_v22 = vand.u32 4294901760, %v185_v15  ;;  %v2423_v26 = vand.u32 4294901760, %v192_v19  ;;  %v2432_v31 = vsub.f32 %v38_v13, %v2411_v20  ;;  %v2438_v36 = vand.u32 4294901760, %v199_v24  ;;  %s2527_s18 = smov 0  }
  0x23   :  { %v114_v25 = vand.u32 4294901760, %v2407_v18  ;;  %v180_v28 = vsub.f32 %v178_v14, %v2414_v21  ;;  %v124_v30 = vand.u32 4294901760, %v2419_v23  ;;  %v134_v38 = vand.u32 4294901760, %v2426_v27  ;;  %s730_s12 = sadd.s32 8, %s1961_s8 }
  0x24   :  { %v187_v29 = vsub.f32 %v185_v15, %v2416_v22  ;;  %2062 = vmatpush3.xpose.msra.mxu0 %v2378_v4  ;;  %v194_v35 = vsub.f32 %v192_v19, %v2423_v26  ;;  %v144_v40 = vand.u32 4294901760, %v2432_v31  ;;  %v201_v42 = vsub.f32 %v199_v24, %v2438_v36 }
  0x25   :  { %v115_v32 = vsub.f32 %v2407_v18, %v114_v25  ;;  %2063 = vmatprep.subr.mxu0 %v2383_v8  ;;  %v181_v33 = vand.u32 4294901760, %v180_v28  ;;  %v125_v39 = vsub.f32 %v2419_v23, %v124_v30  ;;  %v135_v43 = vsub.f32 %v2426_v27, %v134_v38 }
  0x26   :  { %v188_v34 = vand.u32 4294901760, %v187_v29  ;;  %v195_v41 = vand.u32 4294901760, %v194_v35  ;;  %v145_v45 = vsub.f32 %v2432_v31, %v144_v40  ;;  %v202_v46 = vand.u32 4294901760, %v201_v42  ;;  %s738_s13 = sadd.s32 16, %s1962_s10 }
  0x27   :  { %v116_v37 = vand.u32 4294901760, %v115_v32  ;;  %2073 = vmatprep.subr.mxu1 %v181_v33  ;;  %v126_v44 = vand.u32 4294901760, %v125_v39  ;;  %v136_v47 = vand.u32 4294901760, %v135_v43  ;;  %s746_s14 = sadd.s32 24, %s1963_s11 }
  0x28   :  { %2064 = vmatpush3.xpose.msra.mxu0 %v2383_v8  ;;  %2074 = vmatpush3.xpose.msra.mxu1 %v181_v33  ;;  %v146_v48 = vand.u32 4294901760, %v145_v45 }
  0x29   :  { %2065 = vmatprep.subr.mxu0 %v2385_v9  ;;  %2075 = vmatprep.subr.mxu1 %v188_v34 }
  0x2a   :  { %2067 = vmatprep.mubr.f32.mxu0 %v116_v37 }
  0x2c   :  { %2066 = vmatpush3.xpose.msra.mxu0 %v2385_v9  ;;  %2076 = vmatpush3.xpose.msra.mxu1 %v188_v34 }
  0x2d   :  { %2077 = vmatprep.subr.mxu1 %v195_v41  ;;  %2087 = vmatprep.subr.mxu0 %v178_v14 }
  0x2f   :  { %2068 = vmatmul.mubr.f32.vlgmr.msra.gmra.mxu0 %v126_v44 }
  0x30   :  { %2078 = vmatpush3.xpose.msra.mxu1 %v195_v41  ;;  %2088 = vmatpush3.xpose.msra.mxu0 %v178_v14 }
  0x31   :  { %2079 = vmatprep.subr.mxu1 %v202_v46  ;;  %2089 = vmatprep.subr.mxu0 %v185_v15 }
  0x32   :  { %2070 = vmatprep.mubr.f32.mxu0 %v136_v47 }
  0x33   :  { %2071 = vmatmul.mubr.f32.gmra.mxu0 %v146_v48 }
  0x34   :  { %2080 = vmatpush3.xpose.msra.mxu1 %v202_v46  ;;  %2090 = vmatpush3.xpose.msra.mxu0 %v185_v15 }
  0x35   :  { %2091 = vmatprep.subr.mxu0 %v192_v19  ;;  %2101 = vmatprep.subr.mxu1 %v2376_v3 }
  0x36   :  { %2095 = vmatprep.mubr.f32.mxu0 %v2407_v18 }
  0x37   :  { %2082 = vmatmul.mubr.f32.vlgmr.msra.gmra.mxu1 %v2401_v16 }
  0x38   :  { %2092 = vmatpush3.xpose.msra.mxu0 %v192_v19  ;;  %2102 = vmatpush3.xpose.msra.mxu1 %v2376_v3 }
  0x39   :  { %2093 = vmatprep.subr.mxu0 %v199_v24  ;;  %2103 = vmatprep.subr.mxu1 %v2378_v4 }
  0x3a   :  { %2084 = vmatprep.mubr.f32.mxu1 %v2403_v17 }
  0x3b   :  { %2085 = vmatmul.mubr.f32.gmra.mxu1 %v2411_v20 }
  0x3c   :  { %2094 = vmatpush3.xpose.msra.mxu0 %v199_v24  ;;  %2104 = vmatpush3.xpose.msra.mxu1 %v2378_v4 }
  0x3d   :  { %2105 = vmatprep.subr.mxu1 %v2383_v8  ;;  %2115 = vmatprep.subr.mxu0 %v2414_v21 }
  0x3e   :  { %2109 = vmatprep.mubr.f32.mxu1 %v114_v25 }
  0x3f   :  { %2096 = vmatmul.mubr.f32.vlgmr.msra.gmra.mxu0 %v2419_v23 }
  0x40   :  { %2106 = vmatpush3.xpose.msra.mxu1 %v2383_v8  ;;  %2116 = vmatpush3.xpose.msra.mxu0 %v2414_v21 }
  0x41   :  { %2098 = vmatprep.mubr.f32.mxu0 %v2426_v27  ;;  %2107 = vmatprep.subr.mxu1 %v2385_v9 }
  0x42   :  { %2117 = vmatprep.subr.mxu0 %v2416_v22 }
  0x43   :  { %2099 = vmatmul.mubr.f32.gmra.mxu0 %v2432_v31 }
  0x44   :  { %2108 = vmatpush3.xpose.msra.mxu1 %v2385_v9  ;;  %2118 = vmatpush3.xpose.msra.mxu0 %v2416_v22 }
  0x45   :  { %2119 = vmatprep.subr.mxu0 %v2423_v26  ;;  %2129 = vmatprep.subr.mxu1 %v2376_v3 }
  0x46   :  { %2123 = vmatprep.mubr.f32.mxu0 %v2387_v10 }
  0x47   :  { %2110 = vmatmul.mubr.f32.vlgmr.msra.gmra.mxu1 %v124_v30 }
  0x48   :  { %2120 = vmatpush3.xpose.msra.mxu0 %v2423_v26  ;;  %2130 = vmatpush3.xpose.msra.mxu1 %v2376_v3 }
  0x49   :  { %2112 = vmatprep.mubr.f32.mxu1 %v134_v38  ;;  %2121 = vmatprep.subr.mxu0 %v2438_v36 }
  0x4a   :  { %2131 = vmatprep.subr.mxu1 %v2378_v4 }
  0x4b   :  { %2113 = vmatmul.mubr.f32.gmra.mxu1 %v144_v40 }
  0x4c   :  { %2122 = vmatpush3.xpose.msra.mxu0 %v2438_v36  ;;  %2132 = vmatpush3.xpose.msra.mxu1 %v2378_v4 }
  0x4d   :  { %2133 = vmatprep.subr.mxu1 %v2383_v8  ;;  %2137 = vmatprep.mubr.f32.mxu1 %v2387_v10 }
  0x4f   :  { %2124 = vmatmul.mubr.f32.vlgmr.msra.gmra.mxu0 %v2401_v16 }
  0x50   :  { %2134 = vmatpush3.xpose.msra.mxu1 %v2383_v8  ;;  %2126 = vmatprep.mubr.f32.mxu0 %v2403_v17 }
  0x51   :  { %2135 = vmatprep.subr.mxu1 %v2385_v9 }
  0x53   :  { %2127 = vmatmul.mubr.f32.gmra.mxu0 %v2411_v20 }
  0x54   :  { %2136 = vmatpush3.xpose.msra.mxu1 %v2385_v9 }
  0x57   :  { %2138 = vmatmul.mubr.f32.vlgmr.msra.gmra.mxu1 %v2401_v16 }
  0x58   :  { %2140 = vmatprep.mubr.f32.mxu1 %v2403_v17 }
  0x5b   :  { %2141 = vmatmul.mubr.f32.gmra.mxu1 %v2411_v20 }
  0xef   :  { %v2069_v49 = vpop.f32.mrf.mxu0 }
  0xf1   :  { %v118_v50 = vpop.f32.mrf.mxu0 }
  0xf3   :  { %v2072_v51 = vpop.f32.mrf.mxu0 }
  0xf5   :  { %v138_v53 = vpop.f32.mrf.mxu0 }
  0xf7   :  { %v2083_v52 = vpop.f32.mrf.mxu1 }
  0xf8   :  { %v246_v1 = vadd.f32 %v2083_v52, %v2069_v49 }
  0xf9   :  { %v239_v54 = vpop.f32.mrf.mxu1 }
  0xfa   :  { %v240_v4 = vadd.f32 %v239_v54, %v118_v50 }
  0xfb   :  { %v2086_v56 = vpop.f32.mrf.mxu1 }
  0xfc   :  { %v258_v6 = vadd.f32 %v2086_v56, %v2072_v51 }
  0xfd   :  { %v251_v58 = vpop.f32.mrf.mxu1 }
  0xfe   :  { %v252_v7 = vadd.f32 %v251_v58, %v138_v53 }
  0xff   :  { %v2097_v55 = vpop.f32.mrf.mxu0 }
 0x100   :  { %v345_v5 = vadd.f32 %v2097_v55, %v246_v1 }
 0x101   :  { %v337_v57 = vpop.f32.mrf.mxu0 }
 0x102   :  { %v338_v8 = vadd.f32 %v337_v57, %v240_v4 }
 0x103   :  { %v2100_v59 = vpop.f32.mrf.mxu0 }
 0x104   :  { %v359_v12 = vadd.f32 %v2100_v59, %v258_v6 }
 0x105   :  { %v351_v61 = vpop.f32.mrf.mxu0 }
 0x106   :  { %v352_v15 = vadd.f32 %v351_v61, %v252_v7 }
 0x107   :  { %v2111_v60 = vpop.f32.mrf.mxu1 }
 0x108   :  { %v444_v9 = vadd.f32 %v2111_v60, %v345_v5 }
 0x109   :  { %v435_v62 = vpop.f32.mrf.mxu1 }
 0x10a   :  { %v436_v13 = vadd.f32 %v435_v62, %v338_v8 }
 0x10b   :  { %v2114_v2 = vpop.f32.mrf.mxu1 }
 0x10c   :  { %v460_v17 = vadd.f32 %v2114_v2, %v359_v12 }
 0x10d   :  { %v451_v11 = vpop.f32.mrf.mxu1 }
 0x10e   :  { %v452_v21 = vadd.f32 %v451_v11, %v352_v15 }
 0x10f   :  { %v2125_v63 = vpop.f32.mrf.mxu0 }
 0x110   :  { %v549_v14 = vadd.f32 %v2125_v63, %v444_v9 }
 0x111   :  { %v542_v3 = vpop.f32.mrf.mxu0 }
 0x112   :  { %v543_v18 = vadd.f32 %v542_v3, %v436_v13 }
 0x113   :  { %v2128_v10 = vpop.f32.mrf.mxu0 }
 0x114   :  { %v561_v23 = vadd.f32 %v2128_v10, %v460_v17 }
 0x115   :  { %v554_v19 = vpop.f32.mrf.mxu0 }
 0x116   :  { %v555_v26 = vadd.f32 %v554_v19, %v452_v21 }
 0x117   :  { %v2139_v16 = vpop.f32.mrf.mxu1 }
 0x118   :  { %v642_v20 = vadd.f32 %v2139_v16, %v549_v14 }
 0x119   :  { %v635_v22 = vpop.f32.mrf.mxu1 }
 0x11a   :  { %vm658_vm0 = vcmp.ge.f32.partialorder %v642_v20, 0.0  ;;  %v662_v24 = vmul.f32 0.1, %v642_v20  ;;  %v636_v25 = vadd.f32 %v635_v22, %v543_v18 }
 0x11b   :  { %v2142_v27 = vpop.f32.mrf.mxu1 }
 0x11c   :  { %vm657_vm2 = vcmp.ge.f32.partialorder %v636_v25, 0.0  ;;  %v661_v28 = vmul.f32 0.1, %v636_v25  ;;  %v654_v29 = vadd.f32 %v2142_v27, %v561_v23  ;;  %v666_v30 = vsel %vm658_vm0, %v642_v20, %v662_v24 }
 0x11d   :  { %v647_v31 = vpop.f32.mrf.mxu1  ;;  %v670_v32 = vmul.f32 %v666_v30, %v666_v30  ;;  %v718_v27 = vlaneseq }
 0x11e   :  { %vm660_vm3 = vcmp.ge.f32.partialorder %v654_v29, 0.0  ;;  %v664_v33 = vmul.f32 0.1, %v654_v29  ;;  %v648_v34 = vadd.f32 %v647_v31, %v555_v26  ;;  %v665_v35 = vsel %vm657_vm2, %v636_v25, %v661_v28 }
 0x11f   :  { %v669_v36 = vmul.f32 %v665_v35, %v665_v35  ;;  %v681_v37 = vsel %vm673_vm1, %v670_v32, 0.0  ;;  %v2500_v28 = vshrl.u32 %v718_v27, 7  ;;  %v723_v31 = vstv %s721_s9 }
 0x120   :  { %vm659_vm4 = vcmp.ge.f32.partialorder %v648_v34, 0.0  ;;  %v663_v38 = vmul.f32 0.1, %v648_v34  ;;  %v682_v39 = vrot.slane %v681_v37, 4  ;;  %v668_v40 = vsel %vm660_vm3, %v654_v29, %v664_v33 }
 0x121   :  { %v674_v41 = vsel %vm673_vm1, %v669_v36, 0.0  ;;  %v672_v42 = vmul.f32 %v668_v40, %v668_v40  ;;  %v2502_v29 = vand.u32 127, %v718_v27  ;;  %v731_v33 = vstv %s730_s12 }
 0x122   :  { %v675_v43 = vrot.slane %v674_v41, 4  ;;  %v683_v44 = vadd.f32 %v682_v39, %v681_v37  ;;  %v667_v45 = vsel %vm659_vm4, %v648_v34, %v663_v38  ;;  %v739_v37 = vstv %s738_s13 }
 0x123   :  { %v671_v46 = vmul.f32 %v667_v45, %v667_v45  ;;  %v695_v47 = vsel %vm673_vm1, %v672_v42, 0.0  ;;  %vm724_vm5 = vcmp.lt.s32.totalorder %v2502_v29, %v723_v31  ;;  %vm729_vm6 = vcmp.ge.s32.totalorder %v2502_v29, 8 }
 0x124   :  { %v676_v48 = vadd.f32 %v675_v43, %v674_v41  ;;  %v684_v49 = vrot.slane %v683_v44, 2  ;;  %v696_v50 = vrot.slane %v695_v47, 4  ;;  %vm732_vm7 = vcmp.lt.s32.totalorder %v2502_v29, %v731_v33 }
 0x125   :  { %v688_v51 = vsel %vm673_vm1, %v671_v46, 0.0  ;;  %vm737_vm8 = vcmp.ge.s32.totalorder %v2502_v29, 16  ;;  %vm733_vm9 = vmand %vm729_vm6, %vm732_vm7  ;;  %vm740_vm10 = vcmp.lt.s32.totalorder %v2502_v29, %v739_v37  ;;  %vm745_vm12 = vcmp.ge.s32.totalorder %v2502_v29, 24 }
 0x126   :  { %v677_v52 = vrot.slane %v676_v48, 2  ;;  %v685_v53 = vadd.f32 %v684_v49, %v683_v44  ;;  %v689_v54 = vrot.slane %v688_v51, 4  ;;  %v697_v55 = vadd.f32 %v696_v50, %v695_v47  ;;  %vm741_vm11 = vmand %vm737_vm8, %vm740_vm10 }
 0x127   :  { %v747_v44 = vstv %s746_s14 }
 0x128   :  { %v678_v56 = vadd.f32 %v677_v52, %v676_v48  ;;  %v686_v57 = vrot.slane %v685_v53, 1  ;;  %v690_v58 = vadd.f32 %v689_v54, %v688_v51  ;;  %v698_v59 = vrot.slane %v697_v55, 2 }
 0x129   :  { %vm748_vm13 = vcmp.lt.s32.totalorder %v2502_v29, %v747_v44 }
 0x12a   :  { %v679_v60 = vrot.slane %v678_v56, 1  ;;  %v687_v61 = vadd.f32 %v686_v57, %v685_v53  ;;  %v691_v62 = vrot.slane %v690_v58, 2  ;;  %v699_v63 = vadd.f32 %v698_v59, %v697_v55  ;;  %vm749_vm14 = vmand %vm745_vm12, %vm748_vm13 }
 0x12c   :  { %v680_v1 = vadd.f32 %v679_v60, %v678_v56  ;;  %v703_v2 = vadd.f32 1e-16, %v687_v61  ;;  %v692_v3 = vadd.f32 %v691_v62, %v690_v58  ;;  %v700_v4 = vrot.slane %v699_v63, 1 }
 0x12e   :  { %v702_v5 = vadd.f32 1e-16, %v680_v1  ;;  %2176 = vrsqrt.f32 %v703_v2  ;;  %v693_v6 = vrot.slane %v692_v3, 1  ;;  %v701_v7 = vadd.f32 %v700_v4, %v699_v63 }
 0x130   :  { %2178 = vrsqrt.f32 %v702_v5  ;;  %v694_v8 = vadd.f32 %v693_v6, %v692_v3  ;;  %v705_v9 = vadd.f32 1e-16, %v701_v7 }
 0x132   :  { %v704_v10 = vadd.f32 1e-16, %v694_v8  ;;  %2180 = vrsqrt.f32 %v705_v9 }
 0x134   :  { %2182 = vrsqrt.f32 %v704_v10 }
 0x13b   :  { %v2177_v11 = vpop.eup %2176 }
 0x13c   :  { %v711_v14 = vmul.f32 %v2177_v11, %v666_v30 }
 0x13d   :  { %v2179_v12 = vpop.eup %2178 }
 0x13e   :  { %v710_v13 = vmul.f32 %v2179_v12, %v665_v35  ;;  %v715_v19 = vmul.f32 9.0, %v711_v14 }
 0x13f   :  { %v2181_v15 = vpop.eup %2180 }
 0x140   :  { %v714_v16 = vmul.f32 9.0, %v710_v13  ;;  %v713_v21 = vmul.f32 %v2181_v15, %v668_v40  ;;  %v754_v23 = vsel %vm673_vm1, %v715_v19, -inf  ;;  %v2332_v40 = vmov 0.0  }
 0x141   :  { %v2183_v17 = vpop.eup %2182  ;;  %v726_v41 = vsel %vm724_vm5, 1.0, %v2332_v40 }
 0x142   :  { %v751_v18 = vsel %vm673_vm1, %v714_v16, -inf  ;;  %v712_v20 = vmul.f32 %v2183_v17, %v667_v45  ;;  %v717_v25 = vmul.f32 9.0, %v713_v21  ;;  %v734_v47 = vsel %vm733_vm9, 1.0, %v726_v41 }
 0x143   :  { %752 = vmax.xlane.f32.xlu0 %v751_v18  ;;  %v742_v49 = vsel %vm741_vm11, 1.0, %v734_v47 }
 0x144   :  { %v716_v22 = vmul.f32 9.0, %v712_v20  ;;  %v760_v26 = vsel %vm673_vm1, %v717_v25, -inf  ;;  %v750_v50 = vsel %vm749_vm14, 1.0, %v742_v49 }
 0x146   :  { %v757_v24 = vsel %vm673_vm1, %v716_v22, -inf }
 0x147   :  { %755 = vmax.xlane.f32.xlu0 %v754_v23  ;;  %758 = vmax.xlane.f32.xlu1 %v757_v24 }
 0x14b   :  { %761 = vmax.xlane.f32.xlu1 %v760_v26 }
 0x1cc   :  { %v753_v30 = vpop.xlane.xlu0 %752 }
 0x1cd   :  { %v763_v32 = vsub.f32 %v714_v16, %v753_v30 }
 0x1cf   :  { %v767_v34 = vmul.f32 1.442695, %v763_v32 }
 0x1d0   :  { %v756_v35 = vpop.xlane.xlu0 %755  ;;  %v759_v36 = vpop.xlane.xlu1 %758 }
 0x1d1   :  { %2184 = vpow2.f32 %v767_v34  ;;  %v764_v38 = vsub.f32 %v715_v19, %v756_v35  ;;  %v765_v39 = vsub.f32 %v716_v22, %v759_v36 }
 0x1d3   :  { %v769_v42 = vmul.f32 1.442695, %v764_v38  ;;  %v771_v43 = vmul.f32 1.442695, %v765_v39 }
 0x1d4   :  { %v762_v45 = vpop.xlane.xlu1 %761 }
 0x1d5   :  { %2186 = vpow2.f32 %v769_v42  ;;  %v766_v46 = vsub.f32 %v717_v25, %v762_v45 }
 0x1d6   :  { %2188 = vpow2.f32 %v771_v43 }
 0x1d7   :  { %v773_v48 = vmul.f32 1.442695, %v766_v46 }
 0x1d9   :  { %2190 = vpow2.f32 %v773_v48 }
 0x1de   :  { %v2185_v51 = vpop.eup %2184 }
 0x1df   :  { %v775_v52 = vmul.f32 %v2185_v51, %v750_v50 }
 0x1e1   :  { %788 = vrot.lane.b32.xlu0 %v775_v52, %s2333_s15  ;;  %780 = vst.msk [vmem:[#allocation2] sm:$0xff] %vm3133_vm15, %v775_v52 }
 0x1e2   :  { %v2187_v53 = vpop.eup %2186 }
 0x1e3   :  { %v2189_v54 = vpop.eup %2188  ;;  %v776_v55 = vmul.f32 %v2187_v53, %v750_v50 }
 0x1e4   :  { %v777_v56 = vmul.f32 %v2189_v54, %v750_v50 }
 0x1e5   :  { %805 = vrot.lane.b32.xlu0 %v775_v52, %s2334_s16  ;;  %781 = vst.msk [vmem:[#allocation2 + $0x8] sm:$0xff] %vm3133_vm15, %v776_v55  ;;  %790 = vrot.lane.b32.xlu1 %v776_v55, %s2333_s15 }
 0x1e6   :  { %v2191_v57 = vpop.eup %2190  ;;  %782 = vst.msk [vmem:[#allocation2 + $0x10] sm:$0xff] %vm3133_vm15, %v777_v56 }
 0x1e7   :  { %v778_v58 = vmul.f32 %v2191_v57, %v750_v50 }
 0x1e9   :  { %822 = vrot.lane.b32.xlu0 %v775_v52, %s2335_s17  ;;  %807 = vrot.lane.b32.xlu1 %v776_v55, %s2334_s16  ;;  %783 = vst.msk [vmem:[#allocation2 + $0x18] sm:$0xff] %vm3133_vm15, %v778_v58 }
 0x1ed   :  { %824 = vrot.lane.b32.xlu1 %v776_v55, %s2335_s17  ;;  %809 = vrot.lane.b32.xlu0 %v777_v56, %s2334_s16 }
 0x1f1   :  { %826 = vrot.lane.b32.xlu0 %v777_v56, %s2335_s17  ;;  %794 = vrot.lane.b32.xlu1 %v778_v58, %s2333_s15 }
 0x1f5   :  { %811 = vrot.lane.b32.xlu1 %v778_v58, %s2334_s16 }
 0x1f9   :  { %792 = vrot.lane.b32.xlu1 %v777_v56, %s2333_s15 }
 0x1fd   :  { %828 = vrot.lane.b32.xlu1 %v778_v58, %s2335_s17 }
 0x253   :  { %v789_v59 = vpop.permute.xlu0 %788 }
 0x254   :  { %801 = vst.msk [vmem:[#allocation2 + $0x20] sm:$0xff] %vm3133_vm15, %v789_v59 }
 0x257   :  { %v806_v60 = vpop.permute.xlu0 %805  ;;  %v791_v61 = vpop.permute.xlu1 %790 }
 0x258   :  { %818 = vst.msk [vmem:[#allocation2 + $0x40] sm:$0xff] %vm3133_vm15, %v806_v60  ;;  %802 = vst.msk [vmem:[#allocation2 + $0x28] sm:$0xff] %vm3133_vm15, %v791_v61 }
 0x25b   :  { %v823_v62 = vpop.permute.xlu0 %822  ;;  %v808_v63 = vpop.permute.xlu1 %807 }
 0x25c   :  { %835 = vst.msk [vmem:[#allocation2 + $0x60] sm:$0xff] %vm3133_vm15, %v823_v62  ;;  %819 = vst.msk [vmem:[#allocation2 + $0x48] sm:$0xff] %vm3133_vm15, %v808_v63 }
 0x25f   :  { %v810_v1 = vpop.permute.xlu0 %809  ;;  %v825_v2 = vpop.permute.xlu1 %824 }
 0x260   :  { %820 = vst.msk [vmem:[#allocation2 + $0x50] sm:$0xff] %vm3133_vm15, %v810_v1  ;;  %836 = vst.msk [vmem:[#allocation2 + $0x68] sm:$0xff] %vm3133_vm15, %v825_v2 }
 0x263   :  { %v827_v3 = vpop.permute.xlu0 %826  ;;  %v795_v4 = vpop.permute.xlu1 %794 }
 0x264   :  { %837 = vst.msk [vmem:[#allocation2 + $0x70] sm:$0xff] %vm3133_vm15, %v827_v3  ;;  %804 = vst.msk [vmem:[#allocation2 + $0x38] sm:$0xff] %vm3133_vm15, %v795_v4 }
 0x267   :  { %v812_v5 = vpop.permute.xlu1 %811 }
 0x268   :  { %821 = vst.msk [vmem:[#allocation2 + $0x58] sm:$0xff] %vm3133_vm15, %v812_v5 }
 0x26b   :  { %v793_v6 = vpop.permute.xlu1 %792 }
 0x26c   :  { %803 = vst.msk [vmem:[#allocation2 + $0x30] sm:$0xff] %vm3133_vm15, %v793_v6 }
 0x26f   :  { %v829_v7 = vpop.permute.xlu1 %828 }
 0x270   :  { %838 = vst.msk [vmem:[#allocation2 + $0x78] sm:$0xff] %vm3133_vm15, %v829_v7 }
 0x271 LB: > { %s1964_s19 = sshll.u32 %s2326_s18, 5  ;;  %vm3144_vm15 = vcmask 64512   ;;  %s1965_s21 = sshll.u32 %s2326_s18, 3  ;;  %v991_v47 = vld [vmem:[%s3130_s2 + $0x8] sm:$0xff]  ;;  %v990_v49 = vld [vmem:[%s3130_s2] sm:$0xff]  ;;  %v993_v51 = vld [vmem:[%s3130_s2 + $0x18] sm:$0xff]  ;;  %v2557_v58 = vsub.s32 %v2502_v29, %v2500_v28  ;;  %vm1325_vm7 = vcmp.lt.s32.totalorder %v2502_v29, %v2500_v28  ;;  %s2326_s18 = sphi %s2527_s18, %s847_s18  }
 0x272   : > { %s852_s20 = scalar_lea.vmem [#allocation2], %s1964_s19  ;;  %s858_s22 = scalar_lea.vmem [#allocation5], %s1965_s21  ;;  %v992_v53 = vld [vmem:[%s3130_s2 + $0x10] sm:$0xff]  ;;  %v2336_v56 = vmov 0   ;;  %vm3136_vm4 = vcmask 1041409   ;;  %vm3135_vm5 = vcmask 1042434  }
 0x273   : > { %v859_v16 = vld [vmem:[%s858_s22] sm:$0xff]  ;;  %s849_s0 = sld [smem:[#allocation4 + %s2326_s18]]  ;;  %2193 = vset.pattern.permute.xlu1 %v2336_v56  ;;  %2192 = vset.pattern.permute.xlu0 %v2336_v56  ;;  %vm3134_vm6 = vcmask 1043459   ;;  %s1943_s6 = scalar_lea.vmem %s3132_s4, %s2326_s18 }
 0x274   : > { %2143 = vmatprep.subr.mxu0 %v859_v16  ;;  %s847_s18 = sadd.s32 1, %s2326_s18  }
 0x275   : > { %2144 = vmatpush3.msra.mxu0 %v859_v16  ;;  %p844_p10 = scmp.ge.s32.totalorder %s847_s18, 4  }
 0x277   : > { %v855_v8 = vld [vmem:[%s852_s20 + $0x10] sm:$0xff]  ;;  %v853_v9 = vld [vmem:[%s852_s20] sm:$0xff]  ;;  %v856_v10 = vld [vmem:[%s852_s20 + $0x18] sm:$0xff] }
 0x278   : > { %v866_v11 = vsel %vm3144_vm15, %v855_v8, 0.0  ;;  %v860_v12 = vsel %vm3144_vm15, %v853_v9, 0.0  ;;  %v854_v13 = vld [vmem:[%s852_s20 + $0x8] sm:$0xff]  ;;  %v869_v14 = vsel %vm3144_vm15, %v856_v10, 0.0 }
 0x279   : > { %867 = vadd.xlane.f32.xlu1 %v866_v11  ;;  %861 = vadd.xlane.f32.xlu0 %v860_v12  ;;  %v863_v15 = vsel %vm3144_vm15, %v854_v13, 0.0  ;;  %s850_s23 = scvt.s32.f32 %s849_s0  ;;  %v1328_v11 = vsel %vm1325_vm7, 1, %v2336_v56 }
 0x27b   : > { %v872_v21 = vstv %s850_s23 }
 0x27c   : > { %v873_v22 = vmul.f32 %v872_v21, %v853_v9  ;;  %v874_v26 = vmul.f32 %v872_v21, %v854_v13  ;;  %v875_v30 = vmul.f32 %v872_v21, %v855_v8  ;;  %v876_v35 = vmul.f32 %v872_v21, %v856_v10 }
 0x27d   : > { %870 = vadd.xlane.f32.xlu1 %v869_v14  ;;  %864 = vadd.xlane.f32.xlu0 %v863_v15  ;;  %v2578_v14 = vsub.s32 2, %v2500_v28 }
 0x302   : > { %v868_v17 = vpop.xlane.xlu1 %867  ;;  %v862_v18 = vpop.xlane.xlu0 %861 }
 0x303   : > { %2274 = vrcp.f32 %v862_v18  ;;  %vm877_vm0 = vcmp.gt.f32.partialorder %v873_v22, %v862_v18  ;;  %vm879_vm2 = vcmp.gt.f32.partialorder %v875_v30, %v868_v17 }
 0x304   : > { %2276 = vrcp.f32 %v868_v17  ;;  %v2583_v17 = vsub.s32 3, %v2500_v28 }
 0x306   : > { %v871_v19 = vpop.xlane.xlu1 %870  ;;  %v865_v20 = vpop.xlane.xlu0 %864 }
 0x307   : > { %2278 = vrcp.f32 %v871_v19  ;;  %vm878_vm1 = vcmp.gt.f32.partialorder %v874_v26, %v865_v20  ;;  %vm880_vm3 = vcmp.gt.f32.partialorder %v876_v35, %v871_v19  ;;  %v2337_v35 = vmov 0.0  }
 0x308   : > { %2280 = vrcp.f32 %v865_v20  ;;  %2151 = vmatprep.subr.mxu1 %v2337_v35 }
 0x310   : > { %v2275_v23 = vpop.eup %2274 }
 0x311   : > { %v2277_v24 = vpop.eup %2276  ;;  %v885_v25 = vmul.f32 %v2275_v23, %v853_v9  ;;  %v2571_v9 = vsub.s32 0, %v2500_v28 }
 0x312   : > { %v887_v33 = vmul.f32 %v2277_v24, %v855_v8  ;;  %v2568_v8 = vsub.s32 1, %v2500_v28 }
 0x313   : > { %v889_v31 = vsel %vm877_vm0, %v885_v25, 0.0  ;;  %v1332_v19 = vrot.slane %v1328_v11, %v2571_v9 }
 0x314   : > { %v2279_v27 = vpop.eup %2278  ;;  %2145 = vmatprep.mubr.msk.f32.mxu0 %vm3144_vm15, %v889_v31  ;;  %v891_v38 = vsel %vm879_vm2, %v887_v33, 0.0  ;;  %v1339_v15 = vrot.slane %v1328_v11, %v2568_v8  ;;  %v2598_v33 = vsub.s32 4, %v2500_v28 }
 0x315   : > { %v2281_v32 = vpop.eup %2280  ;;  %v888_v37 = vmul.f32 %v2279_v27, %v856_v10 }
 0x316   : > { %v886_v34 = vmul.f32 %v2281_v32, %v854_v13  ;;  %v1346_v32 = vrot.slane %v1328_v11, %v2578_v14 }
 0x317   : > { %v892_v39 = vsel %vm880_vm3, %v888_v37, 0.0  ;;  %v1360_v37 = vrot.slane %v1328_v11, %v2598_v33 }
 0x318   : > { %v890_v36 = vsel %vm878_vm1, %v886_v34, 0.0 }
 0x319   : > { %2146 = vmatmul.mubr.msk.f32.vlgmr.msra.gmra.mxu0 %vm3144_vm15, %v890_v36 }
 0x31a   : > { %2148 = vmatprep.mubr.msk.f32.mxu0 %vm3144_vm15, %v891_v38  ;;  %v1353_v38 = vrot.slane %v1328_v11, %v2583_v17 }
 0x31d   : > { %2149 = vmatmul.mubr.msk.f32.gmra.mxu0 %vm3144_vm15, %v892_v39  ;;  %v2607_v39 = vsub.s32 6, %v2500_v28 }
 0x3d9   : > { %v2147_v40 = vpop.f32.mrf.mxu0 }
 0x3da   : > { %v1007_v41 = vmul.f32 %v2147_v40, %v2147_v40  ;;  %v995_v50 = vmul.f32 %v2147_v40, %v991_v47  ;;  %v2610_v40 = vsub.s32 5, %v2500_v28 }
 0x3db   : > { %v971_v42 = vpop.f32.mrf.mxu0 }
 0x3dc   : > { %1012 = vadd.xlane.f32.xlu1 %v1007_v41  ;;  %v1006_v43 = vmul.f32 %v971_v42, %v971_v42  ;;  %v994_v52 = vmul.f32 %v990_v49, %v971_v42  ;;  %v1374_v41 = vrot.slane %v1328_v11, %v2607_v39  ;;  %v1367_v42 = vrot.slane %v1328_v11, %v2610_v40 }
 0x3dd   : > { %v2150_v44 = vpop.f32.mrf.mxu0 }
 0x3de   : > { %1010 = vadd.xlane.f32.xlu0 %v1006_v43  ;;  %v1009_v45 = vmul.f32 %v2150_v44, %v2150_v44  ;;  %v997_v54 = vmul.f32 %v2150_v44, %v993_v51  ;;  %v2615_v43 = vsub.s32 7, %v2500_v28 }
 0x3df   : > { %v981_v46 = vpop.f32.mrf.mxu0 }
 0x3e0   : > { %v1008_v48 = vmul.f32 %v981_v46, %v981_v46  ;;  %1016 = vadd.xlane.f32.xlu1 %v1009_v45  ;;  %v996_v55 = vmul.f32 %v992_v53, %v981_v46  ;;  %v1381_v44 = vrot.slane %v1328_v11, %v2615_v43 }
 0x3e2   : > { %1014 = vadd.xlane.f32.xlu0 %v1008_v48 }
 0x3e4   : > { %1000 = vadd.xlane.f32.xlu1 %v995_v50 }
 0x3e6   : > { %998 = vadd.xlane.f32.xlu0 %v994_v52 }
 0x3e8   : > { %1004 = vadd.xlane.f32.xlu1 %v997_v54 }
 0x3ea   : > { %1002 = vadd.xlane.f32.xlu0 %v996_v55 }
 0x465   : > { %v1013_v57 = vpop.xlane.xlu1 %1012 }
 0x466   : > { %v1029_v62 = vrot.slane %v1013_v57, %v2557_v58 }
 0x467   : > { %v1011_v59 = vpop.xlane.xlu0 %1010 }
 0x468   : > { %v1025_v60 = vrot.slane %v1011_v59, %v2557_v58 }
 0x469   : > { %v1017_v61 = vpop.xlane.xlu1 %1016 }
 0x46a   : > { %v1039_v2 = vsel %vm3136_vm4, %v1029_v62, %v1025_v60  ;;  %v1037_v3 = vrot.slane %v1017_v61, %v2557_v58 }
 0x46b   : > { %v1015_v63 = vpop.xlane.xlu0 %1014 }
 0x46c   : > { %v1033_v1 = vrot.slane %v1015_v63, %v2557_v58 }
 0x46d   : > { %v1001_v20 = vpop.xlane.xlu1 %1000 }
 0x46e   : > { %v1041_v4 = vsel %vm3135_vm5, %v1033_v1, %v1039_v2 }
 0x46f   : > { %v1043_v5 = vsel %vm3134_vm6, %v1037_v3, %v1041_v4  ;;  %v999_v21 = vpop.xlane.xlu0 %998 }
 0x470   : > { %v1045_v6 = vmul.f32 %v1043_v5, %v2374_v0 }
 0x471   : > { %v1005_v22 = vpop.xlane.xlu1 %1004 }
 0x472   : > { %v1046_v7 = vmax.f32 %v1045_v6, 1e-16 }
 0x473   : > { %v1003_v23 = vpop.xlane.xlu0 %1002 }
 0x474   : > { %2282 = vrsqrt.f32 %v1046_v7 }
 0x481   : > { %v2283_v10 = vpop.eup %2282 }
 0x482   : > { %v1059_v12 = vrot.slane %v2283_v10, %v2568_v8  ;;  %v1052_v13 = vrot.slane %v2283_v10, %v2571_v9  ;;  %v1066_v16 = vrot.slane %v2283_v10, %v2578_v14  ;;  %v1073_v18 = vrot.slane %v2283_v10, %v2583_v17 }
 0x484   : > { %1061 = vbcast.lane.b32.xlu1 %v1059_v12, 256  ;;  %1054 = vbcast.lane.b32.xlu0 %v1052_v13, 256 }
 0x488   : > { %1068 = vbcast.lane.b32.xlu1 %v1066_v16, 256  ;;  %1341 = vbcast.lane.b32.xlu0 %v1339_v15, 256 }
 0x48c   : > { %1075 = vbcast.lane.b32.xlu1 %v1073_v18, 256 }
 0x490   : > { %1334 = vbcast.lane.b32.xlu1 %v1332_v19, 256 }
 0x4f6   : > { %v1062_v24 = vpop.permute.xlu1 %1061  ;;  %v1055_v25 = vpop.permute.xlu0 %1054 }
 0x4f7   : > { %v2587_v26 = vmul.f32 %v1062_v24, %v1001_v20  ;;  %v2589_v27 = vmul.f32 %v1055_v25, %v999_v21 }
 0x4f9   : > { %1091 = vperm.xlu1 %2193, %v2587_v26   ;;  %1087 = vperm.xlu0 %2192, %v2589_v27  }
 0x4fa   : > { %v1069_v30 = vpop.permute.xlu1 %1068  ;;  %v2620_v46 = vpop.permute.xlu0 %1341 }
 0x4fb   : > { %v2593_v31 = vmul.f32 %v1069_v30, %v1003_v23  ;;  %vm3138_vm12 = vcmp.ne.s32.totalorder %v2620_v46, 0 }
 0x4fd   : > { %1095 = vperm.xlu1 %2193, %v2593_v31  }
 0x4fe   : > { %v1076_v34 = vpop.permute.xlu1 %1075 }
 0x4ff   : > { %v2601_v36 = vmul.f32 %v1076_v34, %v1005_v22 }
 0x501   : > { %1099 = vperm.xlu0 %2192, %v2601_v36   ;;  %1348 = vbcast.lane.b32.xlu1 %v1346_v32, 256 }
 0x502   : > { %v2618_v45 = vpop.permute.xlu1 %1334 }
 0x503   : > { %vm3140_vm8 = vcmp.ne.s32.totalorder %v2618_v45, 0 }
 0x505   : > { %1362 = vbcast.lane.b32.xlu1 %v1360_v37, 256  ;;  %1355 = vbcast.lane.b32.xlu0 %v1353_v38, 256 }
 0x509   : > { %1376 = vbcast.lane.b32.xlu1 %v1374_v41, 256  ;;  %1369 = vbcast.lane.b32.xlu0 %v1367_v42, 256 }
 0x50d   : > { %1383 = vbcast.lane.b32.xlu0 %v1381_v44, 256 }
 0x574   : > { %v2622_v47 = vpop.permute.xlu1 %1091  ;;  %v2628_v50 = vpop.permute.xlu0 %1087 }
 0x575   : > { %v1136_v48 = vrot.slane %v2622_v47, %v2571_v9  ;;  %v1140_v49 = vrot.slane %v2622_v47, %v2568_v8  ;;  %v1112_v52 = vrot.slane %v2628_v50, %v2578_v14  ;;  %v1104_v53 = vrot.slane %v2628_v50, %v2571_v9 }
 0x576   : > { %v1144_v54 = vrot.slane %v2622_v47, %v2578_v14  ;;  %v1108_v59 = vrot.slane %v2628_v50, %v2568_v8  ;;  %v1116_v6 = vrot.slane %v2628_v50, %v2583_v17  ;;  %v1148_v7 = vrot.slane %v2622_v47, %v2583_v17 }
 0x577   : > { %vm1269_vm9 = vcmp.lt.f32.partialorder %v2587_v26, %v1136_v48  ;;  %vm1301_vm10 = vcmp.eq.f32.partialorder %v2587_v26, %v1136_v48  ;;  %vm1302_vm11 = vcmp.eq.f32.partialorder %v2587_v26, %v1140_v49  ;;  %vm1270_vm13 = vcmp.lt.f32.partialorder %v2587_v26, %v1140_v49 }
 0x578   : > { %v2631_v51 = vpop.permute.xlu1 %1095  ;;  %vm1401_vm14 = vmand %vm1301_vm10, %vm3140_vm8  ;;  %vm1295_vm7 = vcmp.eq.f32.partialorder %v2589_v27, %v1112_v52  ;;  %vm1293_vm10 = vcmp.eq.f32.partialorder %v2589_v27, %v1104_v53  ;;  %vm1261_vm6 = vcmp.lt.f32.partialorder %v2589_v27, %v1104_v53  ;;  %vm1262_vm4 = vcmp.lt.f32.partialorder %v2589_v27, %v1108_v59 }
 0x579   : > { %vm1402_vm0 = vmand %vm1302_vm11, %vm3138_vm12  ;;  %vm1303_vm11 = vcmp.eq.f32.partialorder %v2587_v26, %v1144_v54  ;;  %v1168_v10 = vrot.slane %v2631_v51, %v2571_v9  ;;  %v1172_v11 = vrot.slane %v2631_v51, %v2568_v8  ;;  %v1176_v16 = vrot.slane %v2631_v51, %v2578_v14 }
 0x57a   : > { %vm1433_vm1 = vmor %vm1269_vm9, %vm1401_vm14  ;;  %vm1263_vm14 = vcmp.lt.f32.partialorder %v2589_v27, %v1112_v52  ;;  %v1120_v22 = vrot.slane %v2628_v50, %v2598_v33  ;;  %v1152_v23 = vrot.slane %v2622_v47, %v2598_v33  ;;  %v1180_v24 = vrot.slane %v2631_v51, %v2583_v17 }
 0x57b   : > { %vm1434_vm2 = vmor %vm1270_vm13, %vm1402_vm0  ;;  %v1978_v56 = vsel %vm1433_vm1, 1.0, %v2337_v35  ;;  %vm1294_vm0 = vcmp.eq.f32.partialorder %v2589_v27, %v1108_v59  ;;  %v1184_v25 = vrot.slane %v2631_v51, %v2598_v33  ;;  %v1160_v38 = vrot.slane %v2622_v47, %v2607_v39 }
 0x57c   : > { %v2648_v55 = vpop.permute.xlu1 %1348  ;;  %v1979_v57 = vsel %vm1434_vm2, 1.0, %v2337_v35  ;;  %vm1393_vm1 = vmand %vm1293_vm10, %vm3140_vm8  ;;  %vm1271_vm2 = vcmp.lt.f32.partialorder %v2587_v26, %v1144_v54  ;;  %v2669_v61 = vpop.permute.xlu0 %1099  ;;  %vm1264_vm10 = vcmp.lt.f32.partialorder %v2589_v27, %v1116_v6  ;;  %v3154_v48 = vmov 0 }
 0x57d   : > { %vm3137_vm3 = vcmp.ne.s32.totalorder %v2648_v55, 0  ;;  %v2199_v60 = vpack.i.bf16 %v1979_v57, %v1978_v56  ;;  %v2739_v34 = vrot.slane %v2669_v61, %v2583_v17  ;;  %v1200_v41 = vrot.slane %v2669_v61, %v2571_v9 }
 0x57e   : > { %vm1395_vm9 = vmand %vm1295_vm7, %vm3137_vm3  ;;  %v1128_v17 = vrot.slane %v2628_v50, %v2607_v39  ;;  %v2779_v49 = vrot.slane %v2631_v51, %v2607_v39  ;;  %v1156_v52 = vrot.slane %v2622_v47, %v2610_v40  ;;  %v1124_v54 = vrot.slane %v2628_v50, %v2610_v40 }
 0x57f   : > { %vm1403_vm13 = vmand %vm1303_vm11, %vm3137_vm3  ;;  %2200 = vperm.xlu0 %2192, %v2199_v60   ;;  %v3158_v56 = vmov 0  ;;  %v1188_v60 = vrot.slane %v2631_v51, %v2610_v40 }
 0x580   : > { %vm1427_vm15 = vmor %vm1263_vm14, %vm1395_vm9  ;;  %v2677_v4 = vpop.permute.xlu0 %1355  ;;  %vm1272_vm9 = vcmp.lt.f32.partialorder %v2587_v26, %v1148_v7  ;;  %v2710_v21 = vpop.permute.xlu1 %1362 }
 0x581   : > { %vm1435_vm5 = vmor %vm1271_vm2, %vm1403_vm13  ;;  %v1972_v1 = vsel %vm1427_vm15, 1.0, %v2337_v35  ;;  %vm1304_vm15 = vcmp.eq.f32.partialorder %v2587_v26, %v1148_v7  ;;  %vm1277_vm2 = vcmp.lt.f32.partialorder %v2593_v31, %v1168_v10 }
 0x582   : > { %vm1394_vm7 = vmand %vm1294_vm0, %vm3138_vm12  ;;  %v1980_v2 = vsel %vm1435_vm5, 1.0, %v2337_v35  ;;  %vm1309_vm0 = vcmp.eq.f32.partialorder %v2593_v31, %v1168_v10  ;;  %v2880_v10 = vrot.slane %v2669_v61, %v2598_v33 }
 0x583   : > { %vm1425_vm11 = vmor %vm1261_vm6, %vm1393_vm1  ;;  %v2204_v5 = vpack.i.bf16 %v1980_v2, %v1972_v1  ;;  %vm1296_vm6 = vcmp.eq.f32.partialorder %v2589_v27, %v1116_v6  ;;  %vm1310_vm1 = vcmp.eq.f32.partialorder %v2593_v31, %v1172_v11  ;;  %v1164_v1 = vrot.slane %v2622_v47, %v2615_v43 }
 0x584   : > { %vm1426_vm3 = vmor %vm1262_vm4, %vm1394_vm7  ;;  %v1970_v62 = vsel %vm1425_vm11, 1.0, %v2337_v35  ;;  %vm1388_vm4 = vcmp.ne.s32.totalorder %v2677_v4, 0  ;;  %vm1278_vm7 = vcmp.lt.f32.partialorder %v2593_v31, %v1172_v11  ;;  %v2741_v37 = vpop.permute.xlu1 %1376  ;;  %v2755_v42 = vpop.permute.xlu0 %1369  ;;  %v2837_v2 = vrot.slane %v2669_v61, %v2607_v39 }
 0x585   : > { %v1971_v63 = vsel %vm1426_vm3, 1.0, %v2337_v35  ;;  %vm1396_vm5 = vmand %vm1296_vm6, %vm1388_vm4  ;;  %v1204_v4 = vrot.slane %v2669_v61, %v2568_v8 }
 0x586   : > { %v2194_v3 = vpack.i.bf16 %v1971_v63, %v1970_v62  ;;  %vm1404_vm3 = vmand %vm1304_vm15, %vm1388_vm4  ;;  %v3165_v63 = vmov 0 }
 0x587   : > { %vm1428_vm13 = vmor %vm1264_vm10, %vm1396_vm5  ;;  %vm3145_vm10 = vcmp.ne.s32.totalorder %v2648_v55, 0 }
 0x588   : > { %2195 = vperm.xlu1 %2193, %v2194_v3   ;;  %vm1436_vm14 = vmor %vm1272_vm9, %vm1404_vm3  ;;  %v1973_v12 = vsel %vm1428_vm13, 1.0, %v2337_v35  ;;  %vm1311_vm3 = vcmp.eq.f32.partialorder %v2593_v31, %v1176_v16  ;;  %vm3139_vm13 = vcmp.ne.s32.totalorder %v2710_v21, 0  ;;  %v2824_v62 = vpop.permute.xlu0 %1383 }
 0x589   : > { %v1981_v13 = vsel %vm1436_vm14, 1.0, %v2337_v35  ;;  %vm1409_vm11 = vmand %vm1309_vm0, %vm3140_vm8  ;;  %vm1279_vm14 = vcmp.lt.f32.partialorder %v2593_v31, %v1176_v16  ;;  %vm1285_vm8 = vcmp.lt.f32.partialorder %v2601_v36, %v1200_v41 }
 0x58a   : > { %v2214_v15 = vpack.i.bf16 %v1981_v13, %v1973_v12  ;;  %vm1410_vm6 = vmand %vm1310_vm1, %vm3138_vm12  ;;  %vm1297_vm1 = vcmp.eq.f32.partialorder %v2589_v27, %v1120_v22  ;;  %v1208_v12 = vrot.slane %v2669_v61, %v2578_v14  ;;  %v3182_v14 = vmov 0 }
 0x58b   : > { %vm1441_vm15 = vmor %vm1277_vm2, %vm1409_vm11  ;;  %vm1305_vm2 = vcmp.eq.f32.partialorder %v2587_v26, %v1152_v23 }
 0x58c   : > { %2205 = vperm.xlu1 %2193, %v2204_v5   ;;  %vm1442_vm5 = vmor %vm1278_vm7, %vm1410_vm6  ;;  %v1986_v18 = vsel %vm1441_vm15, 1.0, %v2337_v35  ;;  %vm1312_vm6 = vcmp.eq.f32.partialorder %v2593_v31, %v1180_v24  ;;  %vm1313_vm15 = vcmp.eq.f32.partialorder %v2593_v31, %v1184_v25  ;;  %v3170_v5 = vmov 0 }
 0x58d   : > { %v1987_v19 = vsel %vm1442_vm5, 1.0, %v2337_v35  ;;  %vm1411_vm9 = vmand %vm1311_vm3, %vm3145_vm10  ;;  %vm1273_vm3 = vcmp.lt.f32.partialorder %v2587_v26, %v1152_v23 }
 0x58e   : > { %v2209_v20 = vpack.i.bf16 %v1987_v19, %v1986_v18  ;;  %vm2725_vm0 = vmor %vm1279_vm14, %vm1411_vm9  ;;  %vm3141_vm9 = vcmp.ne.s32.totalorder %v2741_v37, 0  ;;  %vm1265_vm14 = vcmp.lt.f32.partialorder %v2589_v27, %v1120_v22  ;;  %v1228_v22 = vrot.slane %v2669_v61, %v2615_v43 }
 0x58f   : > { %vm2733_vm7 = vmand %vm1297_vm1, %vm3139_vm13 }
 0x590   : > { %2215 = vperm.xlu1 %2193, %v2214_v15   ;;  %2210 = vperm.xlu0 %2192, %v2209_v20   ;;  %vm1405_vm11 = vmand %vm1305_vm2, %vm3139_vm13  ;;  %vm1280_vm2 = vcmp.lt.f32.partialorder %v2593_v31, %v1180_v24  ;;  %v3188_v20 = vmov 0 }
 0x591   : > { %vm1412_vm5 = vmand %vm1312_vm6, %vm1388_vm4  ;;  %vm1320_vm6 = vcmp.eq.f32.partialorder %v2601_v36, %v2739_v34 }
 0x592   : > { %vm2760_vm10 = vmand %vm1313_vm15, %vm3139_vm13  ;;  %vm1307_vm15 = vcmp.eq.f32.partialorder %v2587_v26, %v1160_v38 }
 0x593   : > { %vm2766_vm1 = vmor %vm1273_vm3, %vm1405_vm11  ;;  %vm1317_vm11 = vcmp.eq.f32.partialorder %v2601_v36, %v1200_v41  ;;  %vm1281_vm3 = vcmp.lt.f32.partialorder %v2593_v31, %v1184_v25  ;;  %v1196_v41 = vrot.slane %v2631_v51, %v2615_v43 }
 0x594   : > { %vm2773_vm12 = vmor %vm1280_vm2, %vm1412_vm5  ;;  %vm1299_vm5 = vcmp.eq.f32.partialorder %v2589_v27, %v1128_v17  ;;  %v1982_v8 = vsel %vm2766_vm1, 1.0, %v2337_v35  ;;  %vm1267_vm1 = vcmp.lt.f32.partialorder %v2589_v27, %v1128_v17 }
 0x595   : > { %v3155_v48 = vsel %vm2773_vm12, 4294967295, %v3154_v48  ;;  %vm2788_vm13 = vmand %vm1320_vm6, %vm1388_vm4 }
 0x596   : > { %vm1407_vm2 = vmand %vm1307_vm15, %vm3141_vm9  ;;  %vm3164_vm15 = vcmp.ne.s32.totalorder %v2618_v45, 0  ;;  %v1988_v45 = vsel %vm2725_vm0, 1.0, %v2337_v35 }
 0x597   : > { %vm2802_vm12 = vmor %vm1265_vm14, %vm2733_vm7  ;;  %vm3142_vm7 = vcmp.ne.s32.totalorder %v2755_v42, 0  ;;  %vm1275_vm14 = vcmp.lt.f32.partialorder %v2587_v26, %v1160_v38 }
 0x598   : > { %v3159_v56 = vsel %vm2802_vm12, 4294967295, %v3158_v56  ;;  %vm2808_vm4 = vmor %vm1281_vm3, %vm2760_vm10  ;;  %vm1315_vm10 = vcmp.eq.f32.partialorder %v2593_v31, %v2779_v49 }
 0x599   : > { %vm2814_vm6 = vmand %vm1299_vm5, %vm3141_vm9  ;;  %vm1306_vm5 = vcmp.eq.f32.partialorder %v2587_v26, %v1156_v52  ;;  %v1990_v30 = vsel %vm2808_vm4, 1.0, %v2337_v35  ;;  %vm1324_vm4 = vcmp.eq.f32.partialorder %v2601_v36, %v1228_v22 }
 0x59a   : > { %vm1417_vm12 = vmand %vm1317_vm11, %vm3164_vm15  ;;  %vm1298_vm11 = vcmp.eq.f32.partialorder %v2589_v27, %v1124_v54 }
 0x59b   : > { %vm2828_vm3 = vmor %vm1275_vm14, %vm1407_vm2  ;;  %vm3143_vm2 = vcmp.ne.s32.totalorder %v2824_v62, 0  ;;  %vm3169_vm14 = vcmp.ne.s32.totalorder %v2741_v37, 0 }
 0x59c   : > { %v3166_v63 = vsel %vm2828_vm3, 4294967295, %v3165_v63  ;;  %vm1449_vm9 = vmor %vm1285_vm8, %vm1417_vm12  ;;  %vm1314_vm8 = vcmp.eq.f32.partialorder %v2593_v31, %v1188_v60  ;;  %vm1282_vm3 = vcmp.lt.f32.partialorder %v2593_v31, %v1188_v60 }
 0x59d   : > { %vm1406_vm15 = vmand %vm1306_vm5, %vm3142_vm7  ;;  %v1994_v3 = vsel %vm1449_vm9, 1.0, %v2337_v35  ;;  %vm1274_vm9 = vcmp.lt.f32.partialorder %v2587_v26, %v1156_v52 }
 0x59e   : > { %vm2849_vm12 = vmand %vm1298_vm11, %vm3142_vm7  ;;  %v2219_v39 = vpack.i.bf16 %v1994_v3, %v1988_v45  ;;  %vm3174_vm11 = vnez %v3155_v48 }
 0x59f   : > { %vm2861_vm0 = vmand %vm1315_vm10, %vm3169_vm14  ;;  %v1989_v7 = vsel %vm3174_vm11, 1.0, %v2337_v35  ;;  %vm1323_vm14 = vcmp.eq.f32.partialorder %v2601_v36, %v2837_v2  ;;  %vm1266_vm11 = vcmp.lt.f32.partialorder %v2589_v27, %v1124_v54 }
 0x5a0   : > { %v3171_v5 = vsel %vm2861_vm0, 4294967295, %v3170_v5  ;;  %vm2868_vm5 = vmand %vm1314_vm8, %vm3142_vm7  ;;  %2220 = vperm.xlu0 %2192, %v2219_v39   ;;  %vm1308_vm8 = vcmp.eq.f32.partialorder %v2587_v26, %v1164_v1  ;;  %v2229_v16 = vpack.i.bf16 %v1989_v7, %v1982_v8 }
 0x5a1   : > { %vm2882_vm10 = vmor %vm1274_vm9, %vm1406_vm15  ;;  %vm3179_vm15 = vcmp.ne.s32.totalorder %v2741_v37, 0 }
 0x5a2   : > { %vm2895_vm7 = vmand %vm1308_vm8, %vm3143_vm2  ;;  %vm1286_vm2 = vcmp.lt.f32.partialorder %v2601_v36, %v1204_v4  ;;  %v1983_v19 = vsel %vm2882_vm10, 1.0, %v2337_v35  ;;  %vm3192_vm10 = vcmp.ne.s32.totalorder %v2710_v21, 0  ;;  %v1132_v21 = vrot.slane %v2628_v50, %v2615_v43 }
 0x5a3   : > { %vm2901_vm9 = vmand %vm1323_vm14, %vm3179_vm15  ;;  %vm1318_vm14 = vcmp.eq.f32.partialorder %v2601_v36, %v1204_v4  ;;  %vm1288_vm15 = vcmp.lt.f32.partialorder %v2601_v36, %v2739_v34  ;;  %v2239_v32 = vpack.i.bf16 %v1990_v30, %v1983_v19  ;;  %v1220_v43 = vrot.slane %v2669_v61, %v2610_v40 }
 0x5a4   : > { %vm2907_vm0 = vmor %vm1267_vm1, %vm2814_vm6  ;;  %vm1276_vm1 = vcmp.lt.f32.partialorder %v2587_v26, %v1164_v1  ;;  %2230 = vperm.xlu0 %2192, %v2229_v16  }
 0x5a5   : > { %v3183_v14 = vsel %vm2907_vm0, 4294967295, %v3182_v14  ;;  %vm2914_vm8 = vmor %vm1266_vm11, %vm2849_vm12  ;;  %vm1321_vm12 = vcmp.eq.f32.partialorder %v2601_v36, %v2880_v10 }
 0x5a6   : > { %vm2923_vm6 = vmor %vm1282_vm3, %vm2868_vm5  ;;  %vm1319_vm5 = vcmp.eq.f32.partialorder %v2601_v36, %v1208_v12  ;;  %v1975_v50 = vsel %vm2914_vm8, 1.0, %v2337_v35  ;;  %vm1291_vm8 = vcmp.lt.f32.partialorder %v2601_v36, %v2837_v2 }
 0x5a7   : > { %vm2936_vm11 = vmor %vm1288_vm15, %vm2788_vm13  ;;  %vm3195_vm13 = vcmp.ne.s32.totalorder %v2620_v46, 0  ;;  %v1991_v37 = vsel %vm2923_vm6, 1.0, %v2337_v35  ;;  %vm1300_vm6 = vcmp.eq.f32.partialorder %v2589_v27, %v1132_v21 }
 0x5a8   : > { %v3189_v20 = vsel %vm2936_vm11, 4294967295, %v3188_v20  ;;  %vm2944_vm3 = vmor %vm1276_vm1, %vm2895_vm7  ;;  %vm3196_vm11 = vnez %v3159_v56  ;;  %vm1287_vm7 = vcmp.lt.f32.partialorder %v2601_v36, %v1208_v12  ;;  %2240 = vperm.xlu0 %2192, %v2239_v32  }
 0x5a9   : > { %vm2951_vm0 = vmand %vm1321_vm12, %vm3192_vm10  ;;  %v1974_v25 = vsel %vm3196_vm11, 1.0, %v2337_v35  ;;  %vm3197_vm12 = vcmp.ne.s32.totalorder %v2648_v55, 0  ;;  %vm3198_vm10 = vnez %v3166_v63  ;;  %v1985_v9 = vsel %vm2944_vm3, 1.0, %v2337_v35 }
 0x5aa   : > { %vm1418_vm15 = vmand %vm1318_vm14, %vm3195_vm13  ;;  %v1984_v46 = vsel %vm3198_vm10, 1.0, %v2337_v35  ;;  %vm3199_vm13 = vcmp.ne.s32.totalorder %v2824_v62, 0  ;;  %vm3206_vm3 = vnez %v3183_v14 }
 0x5ab   : > { %vm1450_vm1 = vmor %vm1286_vm2, %vm1418_vm15  ;;  %vm1283_vm2 = vcmp.lt.f32.partialorder %v2593_v31, %v2779_v49  ;;  %v2249_v17 = vpack.i.bf16 %v1991_v37, %v1984_v46  ;;  %v1976_v49 = vsel %vm3206_vm3, 1.0, %v2337_v35  ;;  %vm1782_vm3 = vcmask 1045509  }
 0x5ac   : > { %v1995_v34 = vsel %vm1450_vm1, 1.0, %v2337_v35  ;;  %vm1419_vm14 = vmand %vm1319_vm5, %vm3197_vm12  ;;  %vm3200_vm5 = vnez %v3171_v5 }
 0x5ad   : > { %v2224_v38 = vpack.i.bf16 %v1974_v25, %v1995_v34  ;;  %vm1451_vm11 = vmor %vm1287_vm7, %vm1419_vm14  ;;  %vm1292_vm7 = vcmp.lt.f32.partialorder %v2601_v36, %v1228_v22  ;;  %2250 = vperm.xlu0 %2192, %v2249_v17  }
 0x5ae   : > { %vm1424_vm15 = vmand %vm1324_vm4, %vm3199_vm13  ;;  %v1996_v44 = vsel %vm1451_vm11, 1.0, %v2337_v35  ;;  %vm1268_vm11 = vcmp.lt.f32.partialorder %v2589_v27, %v1132_v21 }
 0x5af   : > { %vm2985_vm1 = vmor %vm1283_vm2, %vm3200_vm5  ;;  %2225 = vperm.xlu1 %2193, %v2224_v38   ;;  %v2234_v51 = vpack.i.bf16 %v1975_v50, %v1996_v44  ;;  %vm1316_vm2 = vcmp.eq.f32.partialorder %v2593_v31, %v1196_v41 }
 0x5b0   : > { %vm3203_vm12 = vmmov %vm3199_vm13  ;;  %v1992_v52 = vsel %vm2985_vm1, 1.0, %v2337_v35 }
 0x5b1   : > { %vm1400_vm14 = vmand %vm1300_vm6, %vm3203_vm12  ;;  %v2259_v40 = vpack.i.bf16 %v1992_v52, %v1985_v9  ;;  %vm3208_vm6 = vnez %v3189_v20 }
 0x5b2   : > { %vm1456_vm10 = vmor %vm1292_vm7, %vm1424_vm15  ;;  %v1997_v61 = vsel %vm3208_vm6, 1.0, %v2337_v35  ;;  %vm1322_vm7 = vcmp.eq.f32.partialorder %v2601_v36, %v1220_v43 }
 0x5b3   : > { %vm3005_vm4 = vmor %vm1291_vm8, %vm2901_vm9  ;;  %2235 = vperm.xlu1 %2193, %v2234_v51   ;;  %vm1289_vm9 = vcmp.lt.f32.partialorder %v2601_v36, %v2880_v10  ;;  %v2001_v53 = vsel %vm1456_vm10, 1.0, %v2337_v35  ;;  %v2244_v54 = vpack.i.bf16 %v1976_v49, %v1997_v61  ;;  %2260 = vperm.xlu0 %2192, %v2259_v40   ;;  %vm1284_vm8 = vcmp.lt.f32.partialorder %v2593_v31, %v1196_v41 }
 0x5b4   : > { %vm1432_vm13 = vmor %vm1268_vm11, %vm1400_vm14  ;;  %v2000_v57 = vsel %vm3005_vm4, 1.0, %v2337_v35  ;;  %vm1780_vm4 = vcmask 1044484  }
 0x5b5   : > { %vm3207_vm15 = vmmov %vm3203_vm12  ;;  %vm3209_vm12 = vcmp.ne.s32.totalorder %v2755_v42, 0  ;;  %v1977_v56 = vsel %vm1432_vm13, 1.0, %v2337_v35  ;;  %v2269_v59 = vpack.i.bf16 %v2001_v53, %v2000_v57  ;;  %vm1786_vm13 = vcmask 1047559  }
 0x5b6   : > { %vm1416_vm5 = vmand %vm1316_vm2, %vm3207_vm15  ;;  %vm1784_vm2 = vcmask 1046534  }
 0x5b7   : > { %vm1453_vm1 = vmor %vm1289_vm9, %vm2951_vm0  ;;  %2245 = vperm.xlu1 %2193, %v2244_v54   ;;  %vm1290_vm0 = vcmp.lt.f32.partialorder %v2601_v36, %v1220_v43  ;;  %2270 = vperm.xlu0 %2192, %v2269_v59   ;;  %vm3210_vm9 = vcmask 1041409  }
 0x5b8   : > { %vm1422_vm14 = vmand %vm1322_vm7, %vm3209_vm12  ;;  %v1998_v60 = vsel %vm1453_vm1, 1.0, %v2337_v35  ;;  %vm3214_vm1 = vcmask 1043459  }
 0x5b9   : > { %vm1448_vm11 = vmor %vm1284_vm8, %vm1416_vm5  ;;  %v2254_v62 = vpack.i.bf16 %v1977_v56, %v1998_v60  ;;  %vm3212_vm5 = vcmask 1042434  }
 0x5ba   : > { %vm1454_vm10 = vmor %vm1290_vm0, %vm1422_vm14  ;;  %v1993_v42 = vsel %vm1448_vm11, 1.0, %v2337_v35  ;;  %vm3220_vm0 = vcmask 64512  }
 0x5bb   : > { %2255 = vperm.xlu1 %2193, %v2254_v62   ;;  %v1999_v63 = vsel %vm1454_vm10, 1.0, %v2337_v35  ;;  %vm3211_vm15 = vmmov %vm3210_vm9 }
 0x5bc   : > { %v2264_v1 = vpack.i.bf16 %v1993_v42, %v1999_v63  ;;  %vm3213_vm6 = vmmov %vm3212_vm5 }
 0x5bd   : > { %vm3215_vm7 = vmmov %vm3214_vm1 }
 0x5be   : > { %vm3216_vm12 = vmmov %vm3210_vm9 }
 0x5bf   : > { %2265 = vperm.xlu1 %2193, %v2264_v1   ;;  %vm3217_vm14 = vmmov %vm3212_vm5 }
 0x5c0   : > { %vm3218_vm8 = vmmov %vm3214_vm1 }
 0x5c1   : > { %vm3219_vm11 = vmmov %vm3210_vm9 }
 0x5c2   : > { %vm3221_vm10 = vmmov %vm3212_vm5 }
 0x5fa   : > { %v2201_v2 = vpop.permute.xlu0 %2200 }
 0x5fb   : > { %v2203_v6 = vunpack.i.h.bf16 %v2201_v2  ;;  %v2202_v8 = vunpack.i.l.bf16 %v2201_v2 }
 0x5fd   : > { %v1688_v14 = vrot.slane %v2203_v6, %v2557_v58  ;;  %v1684_v15 = vrot.slane %v2202_v8, %v2557_v58 }
 0x5ff   : > { %v1788_v46 = vsel %vm3210_vm9, %v1688_v14, %v1684_v15  ;;  %vm3222_vm9 = vmmov %vm3220_vm0 }
 0x603   : > { %v2196_v45 = vpop.permute.xlu1 %2195 }
 0x604   : > { %v2198_v7 = vunpack.i.h.bf16 %v2196_v45  ;;  %v2197_v10 = vunpack.i.l.bf16 %v2196_v45 }
 0x606   : > { %v1656_v22 = vrot.slane %v2198_v7, %v2557_v58  ;;  %v1652_v23 = vrot.slane %v2197_v10, %v2557_v58 }
 0x607   : > { %v2206_v47 = vpop.permute.xlu1 %2205 }
 0x608   : > { %v2208_v11 = vunpack.i.h.bf16 %v2206_v47  ;;  %v2207_v12 = vunpack.i.l.bf16 %v2206_v47  ;;  %v1777_v43 = vsel %vm3211_vm15, %v1656_v22, %v1652_v23  ;;  %vm3223_vm15 = vmmov %vm3214_vm1 }
 0x60a   : > { %v1692_v24 = vrot.slane %v2208_v11, %v2557_v58  ;;  %v1660_v30 = vrot.slane %v2207_v12, %v2557_v58 }
 0x60b   : > { %v2211_v3 = vpop.permute.xlu0 %2210  ;;  %v2216_v4 = vpop.permute.xlu1 %2215 }
 0x60c   : > { %v2218_v33 = vunpack.i.h.bf16 %v2216_v4  ;;  %v2213_v16 = vunpack.i.h.bf16 %v2211_v3  ;;  %v2217_v18 = vunpack.i.l.bf16 %v2216_v4  ;;  %v2212_v19 = vunpack.i.l.bf16 %v2211_v3 }
 0x60d   : > { %v1789_v51 = vsel %vm3212_vm5, %v1692_v24, %v1788_v46  ;;  %v1778_v52 = vsel %vm3213_vm6, %v1660_v30, %v1777_v43  ;;  %vm3224_vm5 = vmmov %vm3220_vm0 }
 0x60e   : > { %v1696_v21 = vrot.slane %v2218_v33, %v2557_v58  ;;  %v1720_v37 = vrot.slane %v2213_v16, %v2557_v58  ;;  %v1664_v38 = vrot.slane %v2217_v18, %v2557_v58  ;;  %v1716_v55 = vrot.slane %v2212_v19, %v2557_v58  ;;  %vm3225_vm6 = vmmov %vm3220_vm0 }
 0x610   : > { %v1790_v40 = vsel %vm3214_vm1, %v1696_v21, %v1789_v51  ;;  %v1779_v56 = vsel %vm3215_vm7, %v1664_v38, %v1778_v52  ;;  %v1795_v62 = vsel %vm3216_vm12, %v1720_v37, %v1716_v55  ;;  %vm3226_vm7 = vmmov %vm3219_vm11 }
 0x611   : > { %vm3227_vm12 = vmmov %vm3221_vm10 }
 0x61b   : > { %v2221_v39 = vpop.permute.xlu0 %2220 }
 0x61c   : > { %v2223_v41 = vunpack.i.h.bf16 %v2221_v39  ;;  %v2222_v17 = vunpack.i.l.bf16 %v2221_v39 }
 0x61e   : > { %v1748_v42 = vrot.slane %v2223_v41, %v2557_v58  ;;  %v1724_v63 = vrot.slane %v2222_v17, %v2557_v58 }
 0x61f   : > { %v2231_v5 = vpop.permute.xlu0 %2230 }
 0x620   : > { %v2232_v25 = vunpack.i.l.bf16 %v2231_v5  ;;  %v2233_v44 = vunpack.i.h.bf16 %v2231_v5  ;;  %v1796_v33 = vsel %vm3217_vm14, %v1724_v63, %v1795_v62  ;;  %vm3228_vm14 = vmmov %vm3218_vm8 }
 0x622   : > { %v1700_v48 = vrot.slane %v2232_v25, %v2557_v58  ;;  %v1728_v1 = vrot.slane %v2233_v44, %v2557_v58 }
 0x623   : > { %v3039_v13 = vpop.permute.xlu0 %2240 }
 0x624   : > { %v2242_v32 = vunpack.i.l.bf16 %v3039_v13  ;;  %v2243_v3 = vunpack.i.h.bf16 %v3039_v13  ;;  %v1791_v39 = vsel %vm1780_vm4, %v1700_v48, %v1790_v40  ;;  %v1797_v18 = vsel %vm3218_vm8, %v1728_v1, %v1796_v33  ;;  %vm3229_vm8 = vmmov %vm3220_vm0 }
 0x626   : > { %v1704_v53 = vrot.slane %v2242_v32, %v2557_v58  ;;  %v1732_v19 = vrot.slane %v2243_v3, %v2557_v58 }
 0x628   : > { %v2251_v34 = vpop.permute.xlu0 %2250  ;;  %v1792_v8 = vsel %vm1782_vm3, %v1704_v53, %v1791_v39  ;;  %v1798_v52 = vsel %vm1780_vm4, %v1732_v19, %v1797_v18 }
 0x629   : > { %v2252_v50 = vunpack.i.l.bf16 %v2251_v34  ;;  %v2253_v10 = vunpack.i.h.bf16 %v2251_v34 }
 0x62a   : > { %v2226_v20 = vpop.permute.xlu1 %2225 }
 0x62b   : > { %v2228_v49 = vunpack.i.h.bf16 %v2226_v20  ;;  %v2227_v61 = vunpack.i.l.bf16 %v2226_v20  ;;  %v1708_v59 = vrot.slane %v2252_v50, %v2557_v58  ;;  %v1736_v32 = vrot.slane %v2253_v10, %v2557_v58 }
 0x62d   : > { %v1668_v45 = vrot.slane %v2228_v49, %v2557_v58  ;;  %v1752_v4 = vrot.slane %v2227_v61, %v2557_v58  ;;  %v1793_v12 = vsel %vm1784_vm2, %v1708_v59, %v1792_v8 }
 0x62e   : > { %v2236_v9 = vpop.permute.xlu1 %2235  ;;  %v2261_v54 = vpop.permute.xlu0 %2260 }
 0x62f   : > { %v2238_v57 = vunpack.i.h.bf16 %v2236_v9  ;;  %v2262_v60 = vunpack.i.l.bf16 %v2261_v54  ;;  %v2237_v5 = vunpack.i.l.bf16 %v2236_v9  ;;  %v2263_v14 = vunpack.i.h.bf16 %v2261_v54 }
 0x630   : > { %v1802_v24 = vsel %vm3219_vm11, %v1752_v4, %v1748_v42  ;;  %v1781_v21 = vsel %vm1780_vm4, %v1668_v45, %v1779_v56  ;;  %v1799_v54 = vsel %vm1782_vm3, %v1736_v32, %v1798_v52  ;;  %vm3230_vm11 = vmmov %vm3220_vm0 }
 0x631   : > { %v1712_v6 = vrot.slane %v2262_v60, %v2557_v58  ;;  %v1672_v7 = vrot.slane %v2238_v57, %v2557_v58  ;;  %v1756_v25 = vrot.slane %v2237_v5, %v2557_v58  ;;  %v1740_v38 = vrot.slane %v2263_v14, %v2557_v58 }
 0x632   : > { %v2246_v2 = vpop.permute.xlu1 %2245  ;;  %v2271_v23 = vpop.permute.xlu0 %2270 }
 0x633   : > { %v2248_v47 = vunpack.i.h.bf16 %v2246_v2  ;;  %v2247_v11 = vunpack.i.l.bf16 %v2246_v2  ;;  %v1794_v16 = vsel %vm1786_vm13, %v1712_v6, %v1793_v12  ;;  %v1783_v37 = vsel %vm1782_vm3, %v1672_v7, %v1781_v21 }
 0x634   : > { %v1816_v30 = vsel %vm3220_vm0, %v1794_v16, 0.0  ;;  %v2272_v55 = vunpack.i.l.bf16 %v2271_v23  ;;  %v2273_v44 = vunpack.i.h.bf16 %v2271_v23  ;;  %v1803_v48 = vsel %vm3221_vm10, %v1756_v25, %v1802_v24 }
 0x635   : > { %v1676_v13 = vrot.slane %v2248_v47, %v2557_v58  ;;  %v1760_v34 = vrot.slane %v2247_v11, %v2557_v58  ;;  %1817 = vadd.xlane.f32.xlu0 %v1816_v30  ;;  %v1800_v57 = vsel %vm1784_vm2, %v1740_v38, %v1799_v54  ;;  %vm1944_vm0 = vcmask 24576  }
 0x636   : > { %v2256_v15 = vpop.permute.xlu1 %2255  ;;  %v1772_v56 = vrot.slane %v2272_v55, %v2557_v58  ;;  %v1776_v60 = vrot.slane %v2273_v44, %v2557_v58 }
 0x637   : > { %v2258_v20 = vunpack.i.h.bf16 %v2256_v15  ;;  %v2257_v22 = vunpack.i.l.bf16 %v2256_v15  ;;  %v1785_v17 = vsel %vm1784_vm2, %v1676_v13, %v1783_v37  ;;  %v1804_v40 = vsel %vm3223_vm15, %v1760_v34, %v1803_v48 }
 0x639   : > { %v1680_v46 = vrot.slane %v2258_v20, %v2557_v58  ;;  %v1764_v50 = vrot.slane %v2257_v22, %v2557_v58 }
 0x63a   : > { %v2266_v41 = vpop.permute.xlu1 %2265 }
 0x63b   : > { %v2268_v9 = vunpack.i.h.bf16 %v2266_v41  ;;  %v2267_v43 = vunpack.i.l.bf16 %v2266_v41  ;;  %v1787_v51 = vsel %vm1786_vm13, %v1680_v46, %v1785_v17  ;;  %v1805_v59 = vsel %vm1780_vm4, %v1764_v50, %v1804_v40 }
 0x63c   : > { %v1813_v49 = vsel %vm3222_vm9, %v1787_v51, 0.0 }
 0x63d   : > { %v1744_v61 = vrot.slane %v2268_v9, %v2557_v58  ;;  %v1768_v53 = vrot.slane %v2267_v43, %v2557_v58  ;;  %1814 = vadd.xlane.f32.xlu1 %v1813_v49 }
 0x63f   : > { %v1801_v62 = vsel %vm1786_vm13, %v1744_v61, %v1800_v57  ;;  %v1806_v42 = vsel %vm1782_vm3, %v1768_v53, %v1805_v59 }
 0x640   : > { %v1819_v63 = vsel %vm3224_vm5, %v1801_v62, 0.0  ;;  %v1807_v1 = vsel %vm1784_vm2, %v1772_v56, %v1806_v42 }
 0x641   : > { %1820 = vadd.xlane.f32.xlu0 %v1819_v63  ;;  %v1808_v2 = vsel %vm1786_vm13, %v1776_v60, %v1807_v1  ;;  %vm2338_vm13 = vmmov 0  }
 0x642   : > { %v1822_v45 = vsel %vm3225_vm6, %v1808_v2, 0.0  ;;  %2153 = vmatprep.mubr.msk.f32.mxu1 %vm2338_vm13, %v2337_v35  ;;  %v2339_v35 = vmov 0.16666667  }
 0x645   : > { %1823 = vadd.xlane.f32.xlu0 %v1822_v45 }
 0x6be   : > { %v1818_v3 = vpop.xlane.xlu0 %1817 }
 0x6bf   : > { %vm1826_vm1 = vcmp.ge.f32.partialorder %v1818_v3, 2.0 }
 0x6c0   : > { %v1830_v47 = vsel %vm1826_vm1, %v2587_v26, 0.0 }
 0x6c1   : > { %1841 = vperm.xlu0 %2192, %v1830_v47  }
 0x6c6   : > { %v1815_v39 = vpop.xlane.xlu1 %1814 }
 0x6c7   : > { %vm1825_vm4 = vcmp.ge.f32.partialorder %v1815_v39, 2.0 }
 0x6c8   : > { %v1829_v4 = vsel %vm1825_vm4, %v2589_v27, 0.0 }
 0x6c9   : > { %1838 = vperm.xlu1 %2193, %v1829_v4  }
 0x6ca   : > { %v1821_v5 = vpop.xlane.xlu0 %1820 }
 0x6cb   : > { %vm1827_vm3 = vcmp.ge.f32.partialorder %v1821_v5, 2.0 }
 0x6cc   : > { %v1831_v6 = vsel %vm1827_vm3, %v2593_v31, 0.0 }
 0x6cd   : > { %1844 = vperm.xlu1 %2193, %v1831_v6  }
 0x6ce   : > { %v1824_v8 = vpop.xlane.xlu0 %1823 }
 0x6cf   : > { %vm1828_vm2 = vcmp.ge.f32.partialorder %v1824_v8, 2.0 }
 0x6d0   : > { %v1832_v7 = vsel %vm1828_vm2, %v2601_v36, 0.0 }
 0x6d1   : > { %1847 = vperm.xlu1 %2193, %v1832_v7  }
 0x73c   : > { %v1842_v10 = vpop.permute.xlu0 %1841 }
 0x73d   : > { %v1856_v33 = vrot.slane %v1842_v10, %v2557_v58 }
 0x744   : > { %v1839_v26 = vpop.permute.xlu1 %1838 }
 0x745   : > { %v1852_v27 = vrot.slane %v1839_v26, %v2557_v58 }
 0x747   : > { %v1865_v14 = vsel %vm3226_vm7, %v1856_v33, %v1852_v27 }
 0x748   : > { %v1845_v11 = vpop.permute.xlu1 %1844 }
 0x749   : > { %v1860_v12 = vrot.slane %v1845_v11, %v2557_v58 }
 0x74b   : > { %v1866_v36 = vsel %vm3227_vm12, %v1860_v12, %v1865_v14 }
 0x74c   : > { %v1848_v31 = vpop.permute.xlu1 %1847 }
 0x74d   : > { %v1864_v13 = vrot.slane %v1848_v31, %v2557_v58 }
 0x74f   : > { %v1867_v15 = vsel %vm3228_vm14, %v1864_v13, %v1866_v36 }
 0x750   : > { %2152 = vmatpush3.xpose.msk.msra.mxu1 %vm3229_vm8, %v1867_v15 }
 0x753   : > { %2154 = vmatmul.mubr.msk.f32.vlgmr.msra.gmra.mxu1 %vm3230_vm11, %v2339_v35 }
 0x811   :  { %846 = sbr.rel (!%p844_p10) target bundleno = 625 (0x271), region = 49 }
 0x813   : > { %v1939_v16 = vpop.f32.mrf.mxu1 }
 0x814   : > { %1945 = vst.msk [vmem:[%s1943_s6] sm:$0x1] %vm1944_vm0, %v1939_v16 }
 0x815   : > { %v2155_v18 = vpop.f32.mrf.mxu1 }
 0x816   :  { %1950 = vsyncpa [#allocation6], 1 }

</bundles_post_ra>
